<compile_context>
chip_gen: v7x
topology: tpu7x:2x2x1
jax: 0.10.0
libtpu: 0.0.40
codegen_flags: <defaults>
</compile_context>

<pallas_src>
import functools

import jax
import jax.numpy as jnp
from jax.experimental import pallas as pl
from jax.experimental.pallas import tpu as pltpu

EPS = 1e-5  # torch.nn.LayerNorm default


# ---------------------------------------------------------------------------
# Helpers
# ---------------------------------------------------------------------------
def _layernorm(x, gamma, beta):
    mean = jnp.mean(x, axis=-1, keepdims=True)
    var = jnp.mean((x - mean) ** 2, axis=-1, keepdims=True)
    return (x - mean) * jax.lax.rsqrt(var + EPS) * gamma + beta


def _erf(x):
    # Abramowitz & Stegun 7.1.26 (max abs error ~1.5e-7) — uses only
    # exp/mul/add/where so it is guaranteed to lower in Mosaic.
    a1, a2, a3, a4, a5 = (0.254829592, -0.284496736, 1.421413741,
                          -1.453152027, 1.061405429)
    p = 0.3275911
    sgn = jnp.where(x < 0.0, -1.0, 1.0)
    ax = jnp.abs(x)
    t = 1.0 / (1.0 + p * ax)
    poly = ((((a5 * t + a4) * t + a3) * t + a2) * t + a1) * t
    return sgn * (1.0 - poly * jnp.exp(-ax * ax))


def _gelu_exact(x):
    # matches torch.nn.GELU() (erf form)
    return 0.5 * x * (1.0 + _erf(x * (2.0 ** -0.5)))


# ---------------------------------------------------------------------------
# Kernel: one (batch, layer) grid step
# ---------------------------------------------------------------------------
def transformer_kernel(x_ref,
                       aln_g_ref, aln_b_ref, wqkv_ref, wo_ref,
                       fln_g_ref, fln_b_ref, w1_ref, b1_ref, w2_ref, b2_ref,
                       nrm_g_ref, nrm_b_ref,
                       o_ref,
                       x_scr,
                       *, heads, dim_head):
    d = pl.program_id(1)
    n_layers = pl.num_programs(1)

    @pl.when(d == 0)
    def _():
        x_scr[...] = x_ref[...].astype(jnp.float32)

    x = x_scr[...]                                  # (N, D) residual stream, f32
    N, D = x.shape
    H, dh = heads, dim_head
    hd = H * dh
    mmt = wqkv_ref.dtype                            # MXU operand dtype (bf16)

    # ---------------- attention block: x = Attn(LN(x)) + x ----------------
    xn = _layernorm(x, aln_g_ref[...], aln_b_ref[...])          # (N, D) f32
    qkv = jnp.dot(xn.astype(mmt), wqkv_ref[...],
                  preferred_element_type=jnp.float32)           # (N, 3*H*dh)

    def heads_leading(t):                            # (N, H*dh) -> (H, N, dh)
        return jnp.transpose(t.reshape(N, H, dh), (1, 0, 2))

    q = heads_leading(qkv[:, :hd]).astype(mmt)       # softmax scale folded in W_q
    k = heads_leading(qkv[:, hd:2 * hd]).astype(mmt)
    v = heads_leading(qkv[:, 2 * hd:]).astype(mmt)

    s = jnp.einsum('hnd,hmd->hnm', q, k,
                   preferred_element_type=jnp.float32)          # (H, N, N)
    s = s - jnp.max(s, axis=-1, keepdims=True)
    p = jnp.exp(s)
    attn = (p * pl.reciprocal(jnp.sum(p, axis=-1, keepdims=True),
                              approx=True)).astype(mmt)

    ctx = jnp.einsum('hnm,hmd->hnd', attn, v,
                     preferred_element_type=jnp.float32)        # (H, N, dh)
    ctx = jnp.transpose(ctx, (1, 0, 2)).reshape(N, hd).astype(mmt)  # (N, H*dh)
    x = x + jnp.dot(ctx, wo_ref[...], preferred_element_type=jnp.float32)

    # ---------------- FFN block: x = FFN(LN(x)) + x ----------------
    xn = _layernorm(x, fln_g_ref[...], fln_b_ref[...])
    h = jnp.dot(xn.astype(mmt), w1_ref[...],
                preferred_element_type=jnp.float32) + b1_ref[...]
    h = _gelu_exact(h)
    x = x + (jnp.dot(h.astype(mmt), w2_ref[...],
                     preferred_element_type=jnp.float32) + b2_ref[...])

    x_scr[...] = x

    @pl.when(d == n_layers - 1)
    def _():
        o_ref[...] = _layernorm(x, nrm_g_ref[...],
                                nrm_b_ref[...]).astype(o_ref.dtype)


# ---------------------------------------------------------------------------
# Wrapper
# ---------------------------------------------------------------------------
def transformer_forward(x, params, *, heads, dim_head):
    B, N, D = x.shape
    (aln_g, aln_b, wqkv, wo, fln_g, fln_b,
     w1, b1, w2, b2, nrm_g, nrm_b) = params
    depth = wqkv.shape[0]
    hd3 = wqkv.shape[-1]
    hd = wo.shape[1]
    mlp_dim = w1.shape[-1]

    def per_layer(shape_tail):
        # stacked (depth, *shape_tail): one layer slice per depth grid step,
        # pipelined so layer d+1 weights are DMA'd under layer d compute.
        nz = len(shape_tail)
        return pl.BlockSpec((None,) + tuple(shape_tail),
                            lambda b, d, _nz=nz: (d,) + (0,) * _nz)

    in_specs = [
        pl.BlockSpec((None, N, D), lambda b, d: (b, 0, 0)),   # x
        per_layer((1, D)),                                    # attn pre-LN gamma
        per_layer((1, D)),                                    # attn pre-LN beta
        per_layer((D, hd3)),                                  # fused W_qkv
        per_layer((hd, D)),                                   # W_out
        per_layer((1, D)),                                    # ffn pre-LN gamma
        per_layer((1, D)),                                    # ffn pre-LN beta
        per_layer((D, mlp_dim)),                              # W1
        per_layer((1, mlp_dim)),                              # b1
        per_layer((mlp_dim, D)),                              # W2
        per_layer((1, D)),                                    # b2
        pl.BlockSpec((1, D), lambda b, d: (0, 0)),            # final LN gamma
        pl.BlockSpec((1, D), lambda b, d: (0, 0)),            # final LN beta
    ]

    kernel = functools.partial(transformer_kernel, heads=heads,
                               dim_head=dim_head)
    return pl.pallas_call(
        kernel,
        out_shape=jax.ShapeDtypeStruct((B, N, D), x.dtype),
        grid=(B, depth),
        in_specs=in_specs,
        out_specs=pl.BlockSpec((None, N, D), lambda b, d: (b, 0, 0)),
        scratch_shapes=[pltpu.VMEM((N, D), jnp.float32)],     # residual stream
        compiler_params=pltpu.CompilerParams(
            dimension_semantics=("parallel", "arbitrary"),
            vmem_limit_bytes=32 * 1024 * 1024),
    )(x, *params)


# ---------------------------------------------------------------------------
# Parameter initialization (deterministic, synthetic, lane-dense layouts)
# ---------------------------------------------------------------------------
def init_transformer_params(key, dim, depth, heads, dim_head, mlp_dim,
                            param_dtype=jnp.bfloat16):
    k1, k2, k3, k4 = jax.random.split(key, 4)
    inner = heads * dim_head
    scale = dim_head ** -0.5

    def w(k, shape):
        return jax.random.normal(k, shape, jnp.float32) * 0.05

    # fused QKV weight, torch chunk(3) column order [Wq | Wk | Wv];
    # softmax scale folded into Wq before the bf16 cast.
    wqkv = w(k1, (depth, dim, 3 * inner))
    wqkv = wqkv.at[:, :, :inner].multiply(scale).astype(param_dtype)
    wo = w(k2, (depth, inner, dim)).astype(param_dtype)      # to_out (no bias)

    aln_g = jnp.ones((depth, 1, dim), jnp.float32)           # attn pre-LN gamma
    aln_b = jnp.zeros((depth, 1, dim), jnp.float32)          # attn pre-LN beta
    fln_g = jnp.ones((depth, 1, dim), jnp.float32)           # ffn pre-LN gamma
    fln_b = jnp.zeros((depth, 1, dim), jnp.float32)          # ffn pre-LN beta

    w1 = w(k3, (depth, dim, mlp_dim)).astype(param_dtype)    # FFN W1
    b1 = jnp.zeros((depth, 1, mlp_dim), jnp.float32)         # FFN b1
    w2 = w(k4, (depth, mlp_dim, dim)).astype(param_dtype)    # FFN W2
    b2 = jnp.zeros((depth, 1, dim), jnp.float32)             # FFN b2

    nrm_g = jnp.ones((1, dim), jnp.float32)                  # final LN gamma
    nrm_b = jnp.zeros((1, dim), jnp.float32)                 # final LN beta

    return (aln_g, aln_b, wqkv, wo, fln_g, fln_b,
            w1, b1, w2, b2, nrm_g, nrm_b)


# ---------------------------------------------------------------------------
if __name__ == "__main__":
    dim, depth, heads, dim_head, mlp_dim = 32, 2, 4, 8, 64
    B, N = 2, 8

    key = jax.random.PRNGKey(0)
    kx, kp = jax.random.split(key)
    x = jax.random.normal(kx, (B, N, dim), jnp.float32)

    params = init_transformer_params(kp, dim, depth, heads, dim_head, mlp_dim)

    out = transformer_forward(x, params, heads=heads, dim_head=dim_head)
    out = jax.block_until_ready(out)

    assert out.shape == (B, N, dim)
    assert bool(jnp.all(jnp.isfinite(out)))
    print("KERNEL_OK")
</pallas_src>

<mosaic_0001>
module attributes {stable_mosaic.version = 11 : i64} {
  func.func @transformer_kernel(%arg0: i32, %arg1: i32, %arg2: memref<1x8x32xf32, #tpu.memory_space<vmem>>, %arg3: memref<1x1x32xf32, #tpu.memory_space<vmem>>, %arg4: memref<1x1x32xf32, #tpu.memory_space<vmem>>, %arg5: memref<1x32x96xbf16, #tpu.memory_space<vmem>>, %arg6: memref<1x32x32xbf16, #tpu.memory_space<vmem>>, %arg7: memref<1x1x32xf32, #tpu.memory_space<vmem>>, %arg8: memref<1x1x32xf32, #tpu.memory_space<vmem>>, %arg9: memref<1x32x64xbf16, #tpu.memory_space<vmem>>, %arg10: memref<1x1x64xf32, #tpu.memory_space<vmem>>, %arg11: memref<1x64x32xbf16, #tpu.memory_space<vmem>>, %arg12: memref<1x1x32xf32, #tpu.memory_space<vmem>>, %arg13: memref<1x32xf32, #tpu.memory_space<vmem>>, %arg14: memref<1x32xf32, #tpu.memory_space<vmem>>, %arg15: memref<1x8x32xf32, #tpu.memory_space<vmem>>, %arg16: memref<8x32xf32, #tpu.memory_space<vmem>>) attributes {dimension_semantics = [#tpu.dimension_semantics<parallel>, #tpu.dimension_semantics<arbitrary>], iteration_bounds = array<i64: 2, 2>, scalar_prefetch = 0 : i64, scratch_operands = 1 : i64, tpu.core_type = #tpu.core_type<tc>, window_params = [{transform_indices = @transform_0, window_bounds = array<i64: 1, 8, 32>}, {transform_indices = @transform_1, window_bounds = array<i64: 1, 1, 32>}, {transform_indices = @transform_2, window_bounds = array<i64: 1, 1, 32>}, {transform_indices = @transform_3, window_bounds = array<i64: 1, 32, 96>}, {transform_indices = @transform_4, window_bounds = array<i64: 1, 32, 32>}, {transform_indices = @transform_5, window_bounds = array<i64: 1, 1, 32>}, {transform_indices = @transform_6, window_bounds = array<i64: 1, 1, 32>}, {transform_indices = @transform_7, window_bounds = array<i64: 1, 32, 64>}, {transform_indices = @transform_8, window_bounds = array<i64: 1, 1, 64>}, {transform_indices = @transform_9, window_bounds = array<i64: 1, 64, 32>}, {transform_indices = @transform_10, window_bounds = array<i64: 1, 1, 32>}, {pipeline_mode = #tpu.pipeline_mode<synchronous>, transform_indices = @transform_11, window_bounds = array<i64: 1, 32>}, {pipeline_mode = #tpu.pipeline_mode<synchronous>, transform_indices = @transform_12, window_bounds = array<i64: 1, 32>}, {transform_indices = @transform_13, window_bounds = array<i64: 1, 8, 32>}]} {
    %c0_i32 = arith.constant 0 : i32
    %0 = arith.cmpi eq, %arg1, %c0_i32 : i32
    %1 = arith.extui %0 : i1 to i32
    %c0_i32_0 = arith.constant 0 : i32
    %2 = arith.cmpi ne, %1, %c0_i32_0 : i32
    scf.if %2 {
      %c0_68 = arith.constant 0 : index
      %c0_69 = arith.constant 0 : index
      %c0_70 = arith.constant 0 : index
      %154 = vector.load %arg2[%c0_68, %c0_69, %c0_70] : memref<1x8x32xf32, #tpu.memory_space<vmem>>, vector<1x8x32xf32>
      %155 = vector.shape_cast %154 : vector<1x8x32xf32> to vector<8x32xf32>
      %c0_71 = arith.constant 0 : index
      %c0_72 = arith.constant 0 : index
      %156 = vector.load %arg16[%c0_71, %c0_72] : memref<8x32xf32, #tpu.memory_space<vmem>>, vector<8x32xf32>
      tpu.vector_store %arg16[%c0_71, %c0_72], %155 {strides = array<i32>} : memref<8x32xf32, #tpu.memory_space<vmem>>, vector<8x32xf32>,
    } else {
    }
    %c0 = arith.constant 0 : index
    %c0_1 = arith.constant 0 : index
    %3 = vector.load %arg16[%c0, %c0_1] : memref<8x32xf32, #tpu.memory_space<vmem>>, vector<8x32xf32>
    %c0_2 = arith.constant 0 : index
    %c0_3 = arith.constant 0 : index
    %c0_4 = arith.constant 0 : index
    %4 = vector.load %arg3[%c0_2, %c0_3, %c0_4] : memref<1x1x32xf32, #tpu.memory_space<vmem>>, vector<1x1x32xf32>
    %5 = vector.shape_cast %4 : vector<1x1x32xf32> to vector<1x32xf32>
    %c0_5 = arith.constant 0 : index
    %c0_6 = arith.constant 0 : index
    %c0_7 = arith.constant 0 : index
    %6 = vector.load %arg4[%c0_5, %c0_6, %c0_7] : memref<1x1x32xf32, #tpu.memory_space<vmem>>, vector<1x1x32xf32>
    %7 = vector.shape_cast %6 : vector<1x1x32xf32> to vector<1x32xf32>
    %cst = arith.constant dense<0.000000e+00> : vector<8xf32>
    %8 = vector.multi_reduction <add>, %3, %cst [1] : vector<8x32xf32> to vector<8xf32>
    %9 = vector.shape_cast %8 : vector<8xf32> to vector<8x1xf32>
    %cst_8 = arith.constant 3.200000e+01 : f32
    %10 = vector.broadcast %cst_8 : f32 to vector<8x1xf32>
    %11 = arith.divf %9, %10 : vector<8x1xf32>
    %12 = vector.broadcast %11 : vector<8x1xf32> to vector<8x32xf32>
    %13 = arith.subf %3, %12 : vector<8x32xf32>
    %14 = arith.mulf %13, %13 : vector<8x32xf32>
    %cst_9 = arith.constant dense<0.000000e+00> : vector<8xf32>
    %15 = vector.multi_reduction <add>, %14, %cst_9 [1] : vector<8x32xf32> to vector<8xf32>
    %16 = vector.shape_cast %15 : vector<8xf32> to vector<8x1xf32>
    %cst_10 = arith.constant 3.200000e+01 : f32
    %17 = vector.broadcast %cst_10 : f32 to vector<8x1xf32>
    %18 = arith.divf %16, %17 : vector<8x1xf32>
    %19 = vector.broadcast %11 : vector<8x1xf32> to vector<8x32xf32>
    %20 = arith.subf %3, %19 : vector<8x32xf32>
    %cst_11 = arith.constant 9.99999974E-6 : f32
    %21 = vector.broadcast %cst_11 : f32 to vector<8x1xf32>
    %22 = arith.addf %18, %21 : vector<8x1xf32>
    %23 = math.rsqrt %22 : vector<8x1xf32>
    %24 = vector.broadcast %23 : vector<8x1xf32> to vector<8x32xf32>
    %25 = arith.mulf %20, %24 : vector<8x32xf32>
    %26 = vector.broadcast %5 : vector<1x32xf32> to vector<8x32xf32>
    %27 = arith.mulf %25, %26 : vector<8x32xf32>
    %28 = vector.broadcast %7 : vector<1x32xf32> to vector<8x32xf32>
    %29 = arith.addf %27, %28 : vector<8x32xf32>
    %30 = arith.truncf %29 : vector<8x32xf32> to vector<8x32xbf16>
    %c0_12 = arith.constant 0 : index
    %c0_13 = arith.constant 0 : index
    %c0_14 = arith.constant 0 : index
    %31 = vector.load %arg5[%c0_12, %c0_13, %c0_14] : memref<1x32x96xbf16, #tpu.memory_space<vmem>>, vector<1x32x96xbf16>
    %32 = vector.shape_cast %31 : vector<1x32x96xbf16> to vector<32x96xbf16>
    %cst_15 = arith.constant dense<0.000000e+00> : vector<8x96xf32>
    %33 = tpu.matmul %30, %32, %cst_15 {dimension_numbers = #tpu.dot_dimension_numbers<[1], [0], [0], [1], [0, 0, 1, 1], [], []>} : vector<8x32xbf16>, vector<32x96xbf16>, vector<8x96xf32> -> vector<8x96xf32>
    %34 = vector.extract_strided_slice %33 {offsets = [0, 0], sizes = [8, 32], strides = [1, 1]} : vector<8x96xf32> to vector<8x32xf32>
    %35 = vector.shape_cast %34 : vector<8x32xf32> to vector<8x4x8xf32>
    %36 = tpu.transpose %35, [1, 0, 2] : vector<8x4x8xf32> -> vector<4x8x8xf32>
    %37 = arith.truncf %36 : vector<4x8x8xf32> to vector<4x8x8xbf16>
    %38 = vector.extract_strided_slice %33 {offsets = [0, 32], sizes = [8, 32], strides = [1, 1]} : vector<8x96xf32> to vector<8x32xf32>
    %39 = vector.shape_cast %38 : vector<8x32xf32> to vector<8x4x8xf32>
    %40 = tpu.transpose %39, [1, 0, 2] : vector<8x4x8xf32> -> vector<4x8x8xf32>
    %41 = arith.truncf %40 : vector<4x8x8xf32> to vector<4x8x8xbf16>
    %42 = vector.extract_strided_slice %33 {offsets = [0, 64], sizes = [8, 32], strides = [1, 1]} : vector<8x96xf32> to vector<8x32xf32>
    %43 = vector.shape_cast %42 : vector<8x32xf32> to vector<8x4x8xf32>
    %44 = tpu.transpose %43, [1, 0, 2] : vector<8x4x8xf32> -> vector<4x8x8xf32>
    %45 = arith.truncf %44 : vector<4x8x8xf32> to vector<4x8x8xbf16>
    "tpu.trace_start"() <{level = 10 : i32, message = "hnd,hmd->hnm"}> : () -> ()
    %cst_16 = arith.constant dense<0.000000e+00> : vector<4x8x8xf32>
    %46 = tpu.matmul %37, %41, %cst_16 {dimension_numbers = #tpu.dot_dimension_numbers<[2], [2], [1], [1], [0, 0, 0, 1, 1, 1], [0], [0]>} : vector<4x8x8xbf16>, vector<4x8x8xbf16>, vector<4x8x8xf32> -> vector<4x8x8xf32>
    "tpu.trace_stop"() : () -> ()
    %cst_17 = arith.constant dense<0xFF800000> : vector<4x8xf32>
    %47 = vector.multi_reduction <maximumf>, %46, %cst_17 [2] : vector<4x8x8xf32> to vector<4x8xf32>
    %48 = vector.shape_cast %47 : vector<4x8xf32> to vector<4x8x1xf32>
    %49 = vector.broadcast %48 : vector<4x8x1xf32> to vector<4x8x8xf32>
    %50 = arith.subf %46, %49 : vector<4x8x8xf32>
    %51 = math.exp %50 : vector<4x8x8xf32>
    %cst_18 = arith.constant dense<0.000000e+00> : vector<4x8xf32>
    %52 = vector.multi_reduction <add>, %51, %cst_18 [2] : vector<4x8x8xf32> to vector<4x8xf32>
    %53 = vector.shape_cast %52 : vector<4x8xf32> to vector<4x8x1xf32>
    %54 = tpu.reciprocal %53 {approx = true} : vector<4x8x1xf32> -> vector<4x8x1xf32>
    %55 = vector.broadcast %54 : vector<4x8x1xf32> to vector<4x8x8xf32>
    %56 = arith.mulf %51, %55 : vector<4x8x8xf32>
    %57 = arith.truncf %56 : vector<4x8x8xf32> to vector<4x8x8xbf16>
    "tpu.trace_start"() <{level = 10 : i32, message = "hnm,hmd->hnd"}> : () -> ()
    %cst_19 = arith.constant dense<0.000000e+00> : vector<4x8x8xf32>
    %58 = tpu.matmul %57, %45, %cst_19 {dimension_numbers = #tpu.dot_dimension_numbers<[2], [1], [1], [2], [0, 0, 0, 1, 1, 2], [0], [0]>} : vector<4x8x8xbf16>, vector<4x8x8xbf16>, vector<4x8x8xf32> -> vector<4x8x8xf32>
    "tpu.trace_stop"() : () -> ()
    %59 = tpu.transpose %58, [1, 0, 2] : vector<4x8x8xf32> -> vector<8x4x8xf32>
    %60 = vector.shape_cast %59 : vector<8x4x8xf32> to vector<8x32xf32>
    %61 = arith.truncf %60 : vector<8x32xf32> to vector<8x32xbf16>
    %c0_20 = arith.constant 0 : index
    %c0_21 = arith.constant 0 : index
    %c0_22 = arith.constant 0 : index
    %62 = vector.load %arg6[%c0_20, %c0_21, %c0_22] : memref<1x32x32xbf16, #tpu.memory_space<vmem>>, vector<1x32x32xbf16>
    %63 = vector.shape_cast %62 : vector<1x32x32xbf16> to vector<32x32xbf16>
    %cst_23 = arith.constant dense<0.000000e+00> : vector<8x32xf32>
    %64 = tpu.matmul %61, %63, %cst_23 {dimension_numbers = #tpu.dot_dimension_numbers<[1], [0], [0], [1], [0, 0, 1, 1], [], []>} : vector<8x32xbf16>, vector<32x32xbf16>, vector<8x32xf32> -> vector<8x32xf32>
    %65 = arith.addf %3, %64 : vector<8x32xf32>
    %c0_24 = arith.constant 0 : index
    %c0_25 = arith.constant 0 : index
    %c0_26 = arith.constant 0 : index
    %66 = vector.load %arg7[%c0_24, %c0_25, %c0_26] : memref<1x1x32xf32, #tpu.memory_space<vmem>>, vector<1x1x32xf32>
    %67 = vector.shape_cast %66 : vector<1x1x32xf32> to vector<1x32xf32>
    %c0_27 = arith.constant 0 : index
    %c0_28 = arith.constant 0 : index
    %c0_29 = arith.constant 0 : index
    %68 = vector.load %arg8[%c0_27, %c0_28, %c0_29] : memref<1x1x32xf32, #tpu.memory_space<vmem>>, vector<1x1x32xf32>
    %69 = vector.shape_cast %68 : vector<1x1x32xf32> to vector<1x32xf32>
    %cst_30 = arith.constant dense<0.000000e+00> : vector<8xf32>
    %70 = vector.multi_reduction <add>, %65, %cst_30 [1] : vector<8x32xf32> to vector<8xf32>
    %71 = vector.shape_cast %70 : vector<8xf32> to vector<8x1xf32>
    %cst_31 = arith.constant 3.200000e+01 : f32
    %72 = vector.broadcast %cst_31 : f32 to vector<8x1xf32>
    %73 = arith.divf %71, %72 : vector<8x1xf32>
    %74 = vector.broadcast %73 : vector<8x1xf32> to vector<8x32xf32>
    %75 = arith.subf %65, %74 : vector<8x32xf32>
    %76 = arith.mulf %75, %75 : vector<8x32xf32>
    %cst_32 = arith.constant dense<0.000000e+00> : vector<8xf32>
    %77 = vector.multi_reduction <add>, %76, %cst_32 [1] : vector<8x32xf32> to vector<8xf32>
    %78 = vector.shape_cast %77 : vector<8xf32> to vector<8x1xf32>
    %cst_33 = arith.constant 3.200000e+01 : f32
    %79 = vector.broadcast %cst_33 : f32 to vector<8x1xf32>
    %80 = arith.divf %78, %79 : vector<8x1xf32>
    %81 = vector.broadcast %73 : vector<8x1xf32> to vector<8x32xf32>
    %82 = arith.subf %65, %81 : vector<8x32xf32>
    %cst_34 = arith.constant 9.99999974E-6 : f32
    %83 = vector.broadcast %cst_34 : f32 to vector<8x1xf32>
    %84 = arith.addf %80, %83 : vector<8x1xf32>
    %85 = math.rsqrt %84 : vector<8x1xf32>
    %86 = vector.broadcast %85 : vector<8x1xf32> to vector<8x32xf32>
    %87 = arith.mulf %82, %86 : vector<8x32xf32>
    %88 = vector.broadcast %67 : vector<1x32xf32> to vector<8x32xf32>
    %89 = arith.mulf %87, %88 : vector<8x32xf32>
    %90 = vector.broadcast %69 : vector<1x32xf32> to vector<8x32xf32>
    %91 = arith.addf %89, %90 : vector<8x32xf32>
    %92 = arith.truncf %91 : vector<8x32xf32> to vector<8x32xbf16>
    %c0_35 = arith.constant 0 : index
    %c0_36 = arith.constant 0 : index
    %c0_37 = arith.constant 0 : index
    %93 = vector.load %arg9[%c0_35, %c0_36, %c0_37] : memref<1x32x64xbf16, #tpu.memory_space<vmem>>, vector<1x32x64xbf16>
    %94 = vector.shape_cast %93 : vector<1x32x64xbf16> to vector<32x64xbf16>
    %cst_38 = arith.constant dense<0.000000e+00> : vector<8x64xf32>
    %95 = tpu.matmul %92, %94, %cst_38 {dimension_numbers = #tpu.dot_dimension_numbers<[1], [0], [0], [1], [0, 0, 1, 1], [], []>} : vector<8x32xbf16>, vector<32x64xbf16>, vector<8x64xf32> -> vector<8x64xf32>
    %c0_39 = arith.constant 0 : index
    %c0_40 = arith.constant 0 : index
    %c0_41 = arith.constant 0 : index
    %96 = vector.load %arg10[%c0_39, %c0_40, %c0_41] : memref<1x1x64xf32, #tpu.memory_space<vmem>>, vector<1x1x64xf32>
    %97 = vector.shape_cast %96 : vector<1x1x64xf32> to vector<1x64xf32>
    %98 = vector.broadcast %97 : vector<1x64xf32> to vector<8x64xf32>
    %99 = arith.addf %95, %98 : vector<8x64xf32>
    %cst_42 = arith.constant 5.000000e-01 : f32
    %100 = vector.broadcast %cst_42 : f32 to vector<8x64xf32>
    %101 = arith.mulf %100, %99 : vector<8x64xf32>
    %cst_43 = arith.constant 0.707106769 : f32
    %102 = vector.broadcast %cst_43 : f32 to vector<8x64xf32>
    %103 = arith.mulf %99, %102 : vector<8x64xf32>
    %cst_44 = arith.constant 0.000000e+00 : f32
    %104 = vector.broadcast %cst_44 : f32 to vector<8x64xf32>
    %105 = arith.cmpf olt, %103, %104 : vector<8x64xf32>
    %cst_45 = arith.constant -1.000000e+00 : f32
    %cst_46 = arith.constant 1.000000e+00 : f32
    %106 = vector.broadcast %cst_45 : f32 to vector<8x64xf32>
    %107 = vector.broadcast %cst_46 : f32 to vector<8x64xf32>
    %108 = arith.select %105, %106, %107 : vector<8x64xi1>, vector<8x64xf32>
    %109 = math.absf %103 : vector<8x64xf32>
    %cst_47 = arith.constant 0.327591091 : f32
    %110 = vector.broadcast %cst_47 : f32 to vector<8x64xf32>
    %111 = arith.mulf %110, %109 : vector<8x64xf32>
    %cst_48 = arith.constant 1.000000e+00 : f32
    %112 = vector.broadcast %cst_48 : f32 to vector<8x64xf32>
    %113 = arith.addf %112, %111 : vector<8x64xf32>
    %cst_49 = arith.constant 1.000000e+00 : f32
    %114 = vector.broadcast %cst_49 : f32 to vector<8x64xf32>
    %115 = arith.divf %114, %113 : vector<8x64xf32>
    %cst_50 = arith.constant 1.06140542 : f32
    %116 = vector.broadcast %cst_50 : f32 to vector<8x64xf32>
    %117 = arith.mulf %116, %115 : vector<8x64xf32>
    %cst_51 = arith.constant -1.45315206 : f32
    %118 = vector.broadcast %cst_51 : f32 to vector<8x64xf32>
    %119 = arith.addf %117, %118 : vector<8x64xf32>
    %120 = arith.mulf %119, %115 : vector<8x64xf32>
    %cst_52 = arith.constant 1.42141378 : f32
    %121 = vector.broadcast %cst_52 : f32 to vector<8x64xf32>
    %122 = arith.addf %120, %121 : vector<8x64xf32>
    %123 = arith.mulf %122, %115 : vector<8x64xf32>
    %cst_53 = arith.constant -0.284496725 : f32
    %124 = vector.broadcast %cst_53 : f32 to vector<8x64xf32>
    %125 = arith.addf %123, %124 : vector<8x64xf32>
    %126 = arith.mulf %125, %115 : vector<8x64xf32>
    %cst_54 = arith.constant 0.254829586 : f32
    %127 = vector.broadcast %cst_54 : f32 to vector<8x64xf32>
    %128 = arith.addf %126, %127 : vector<8x64xf32>
    %129 = arith.mulf %128, %115 : vector<8x64xf32>
    %cst_55 = arith.constant 0.000000e+00 : f32
    %130 = vector.broadcast %cst_55 : f32 to vector<8x64xf32>
    %131 = arith.subf %130, %109 : vector<8x64xf32>
    %132 = arith.mulf %131, %109 : vector<8x64xf32>
    %133 = math.exp %132 : vector<8x64xf32>
    %134 = arith.mulf %129, %133 : vector<8x64xf32>
    %cst_56 = arith.constant 1.000000e+00 : f32
    %135 = vector.broadcast %cst_56 : f32 to vector<8x64xf32>
    %136 = arith.subf %135, %134 : vector<8x64xf32>
    %137 = arith.mulf %108, %136 : vector<8x64xf32>
    %cst_57 = arith.constant 1.000000e+00 : f32
    %138 = vector.broadcast %cst_57 : f32 to vector<8x64xf32>
    %139 = arith.addf %138, %137 : vector<8x64xf32>
    %140 = arith.mulf %101, %139 : vector<8x64xf32>
    %141 = arith.truncf %140 : vector<8x64xf32> to vector<8x64xbf16>
    %c0_58 = arith.constant 0 : index
    %c0_59 = arith.constant 0 : index
    %c0_60 = arith.constant 0 : index
    %142 = vector.load %arg11[%c0_58, %c0_59, %c0_60] : memref<1x64x32xbf16, #tpu.memory_space<vmem>>, vector<1x64x32xbf16>
    %143 = vector.shape_cast %142 : vector<1x64x32xbf16> to vector<64x32xbf16>
    %cst_61 = arith.constant dense<0.000000e+00> : vector<8x32xf32>
    %144 = tpu.matmul %141, %143, %cst_61 {dimension_numbers = #tpu.dot_dimension_numbers<[1], [0], [0], [1], [0, 0, 1, 1], [], []>} : vector<8x64xbf16>, vector<64x32xbf16>, vector<8x32xf32> -> vector<8x32xf32>
    %c0_62 = arith.constant 0 : index
    %c0_63 = arith.constant 0 : index
    %c0_64 = arith.constant 0 : index
    %145 = vector.load %arg12[%c0_62, %c0_63, %c0_64] : memref<1x1x32xf32, #tpu.memory_space<vmem>>, vector<1x1x32xf32>
    %146 = vector.shape_cast %145 : vector<1x1x32xf32> to vector<1x32xf32>
    %147 = vector.broadcast %146 : vector<1x32xf32> to vector<8x32xf32>
    %148 = arith.addf %144, %147 : vector<8x32xf32>
    %149 = arith.addf %65, %148 : vector<8x32xf32>
    %c0_65 = arith.constant 0 : index
    %c0_66 = arith.constant 0 : index
    %150 = vector.load %arg16[%c0_65, %c0_66] : memref<8x32xf32, #tpu.memory_space<vmem>>, vector<8x32xf32>
    tpu.vector_store %arg16[%c0_65, %c0_66], %149 {strides = array<i32>} : memref<8x32xf32, #tpu.memory_space<vmem>>, vector<8x32xf32>,
    %c1_i32 = arith.constant 1 : i32
    %151 = arith.cmpi eq, %arg1, %c1_i32 : i32
    %152 = arith.extui %151 : i1 to i32
    %c0_i32_67 = arith.constant 0 : i32
    %153 = arith.cmpi ne, %152, %c0_i32_67 : i32
    scf.if %153 {
      %c0_68 = arith.constant 0 : index
      %c0_69 = arith.constant 0 : index
      %154 = vector.load %arg13[%c0_68, %c0_69] : memref<1x32xf32, #tpu.memory_space<vmem>>, vector<1x32xf32>
      %c0_70 = arith.constant 0 : index
      %c0_71 = arith.constant 0 : index
      %155 = vector.load %arg14[%c0_70, %c0_71] : memref<1x32xf32, #tpu.memory_space<vmem>>, vector<1x32xf32>
      %cst_72 = arith.constant dense<0.000000e+00> : vector<8xf32>
      %156 = vector.multi_reduction <add>, %149, %cst_72 [1] : vector<8x32xf32> to vector<8xf32>
      %157 = vector.shape_cast %156 : vector<8xf32> to vector<8x1xf32>
      %cst_73 = arith.constant 3.200000e+01 : f32
      %158 = vector.broadcast %cst_73 : f32 to vector<8x1xf32>
      %159 = arith.divf %157, %158 : vector<8x1xf32>
      %160 = vector.broadcast %159 : vector<8x1xf32> to vector<8x32xf32>
      %161 = arith.subf %149, %160 : vector<8x32xf32>
      %162 = arith.mulf %161, %161 : vector<8x32xf32>
      %cst_74 = arith.constant dense<0.000000e+00> : vector<8xf32>
      %163 = vector.multi_reduction <add>, %162, %cst_74 [1] : vector<8x32xf32> to vector<8xf32>
      %164 = vector.shape_cast %163 : vector<8xf32> to vector<8x1xf32>
      %cst_75 = arith.constant 3.200000e+01 : f32
      %165 = vector.broadcast %cst_75 : f32 to vector<8x1xf32>
      %166 = arith.divf %164, %165 : vector<8x1xf32>
      %167 = vector.broadcast %159 : vector<8x1xf32> to vector<8x32xf32>
      %168 = arith.subf %149, %167 : vector<8x32xf32>
      %cst_76 = arith.constant 9.99999974E-6 : f32
      %169 = vector.broadcast %cst_76 : f32 to vector<8x1xf32>
      %170 = arith.addf %166, %169 : vector<8x1xf32>
      %171 = math.rsqrt %170 : vector<8x1xf32>
      %172 = vector.broadcast %171 : vector<8x1xf32> to vector<8x32xf32>
      %173 = arith.mulf %168, %172 : vector<8x32xf32>
      %174 = vector.broadcast %154 : vector<1x32xf32> to vector<8x32xf32>
      %175 = arith.mulf %173, %174 : vector<8x32xf32>
      %176 = vector.broadcast %155 : vector<1x32xf32> to vector<8x32xf32>
      %177 = arith.addf %175, %176 : vector<8x32xf32>
      %c0_77 = arith.constant 0 : index
      %c0_78 = arith.constant 0 : index
      %c0_79 = arith.constant 0 : index
      %178 = vector.load %arg15[%c0_77, %c0_78, %c0_79] : memref<1x8x32xf32, #tpu.memory_space<vmem>>, vector<1x8x32xf32>
      %179 = vector.shape_cast %178 : vector<1x8x32xf32> to vector<8x32xf32>
      %180 = vector.shape_cast %177 : vector<8x32xf32> to vector<1x8x32xf32>
      tpu.vector_store %arg15[%c0_77, %c0_78, %c0_79], %180 {strides = array<i32>} : memref<1x8x32xf32, #tpu.memory_space<vmem>>, vector<1x8x32xf32>,
    } else {
    }
    return
  }
  func.func @transform_0(%arg0: i32, %arg1: i32) -> (i32, i32, i32) {
    %c0_i32 = arith.constant 0 : i32
    %c0_i32_0 = arith.constant 0 : i32
    %c0_i32_1 = arith.constant 0 : i32
    return %arg0, %c0_i32, %c0_i32_0 : i32, i32, i32
  }
  func.func @transform_1(%arg0: i32, %arg1: i32) -> (i32, i32, i32) {
    %c0_i32 = arith.constant 0 : i32
    %c0_i32_0 = arith.constant 0 : i32
    %c0_i32_1 = arith.constant 0 : i32
    return %arg1, %c0_i32, %c0_i32_0 : i32, i32, i32
  }
  func.func @transform_2(%arg0: i32, %arg1: i32) -> (i32, i32, i32) {
    %c0_i32 = arith.constant 0 : i32
    %c0_i32_0 = arith.constant 0 : i32
    %c0_i32_1 = arith.constant 0 : i32
    return %arg1, %c0_i32, %c0_i32_0 : i32, i32, i32
  }
  func.func @transform_3(%arg0: i32, %arg1: i32) -> (i32, i32, i32) {
    %c0_i32 = arith.constant 0 : i32
    %c0_i32_0 = arith.constant 0 : i32
    %c0_i32_1 = arith.constant 0 : i32
    return %arg1, %c0_i32, %c0_i32_0 : i32, i32, i32
  }
  func.func @transform_4(%arg0: i32, %arg1: i32) -> (i32, i32, i32) {
    %c0_i32 = arith.constant 0 : i32
    %c0_i32_0 = arith.constant 0 : i32
    %c0_i32_1 = arith.constant 0 : i32
    return %arg1, %c0_i32, %c0_i32_0 : i32, i32, i32
  }
  func.func @transform_5(%arg0: i32, %arg1: i32) -> (i32, i32, i32) {
    %c0_i32 = arith.constant 0 : i32
    %c0_i32_0 = arith.constant 0 : i32
    %c0_i32_1 = arith.constant 0 : i32
    return %arg1, %c0_i32, %c0_i32_0 : i32, i32, i32
  }
  func.func @transform_6(%arg0: i32, %arg1: i32) -> (i32, i32, i32) {
    %c0_i32 = arith.constant 0 : i32
    %c0_i32_0 = arith.constant 0 : i32
    %c0_i32_1 = arith.constant 0 : i32
    return %arg1, %c0_i32, %c0_i32_0 : i32, i32, i32
  }
  func.func @transform_7(%arg0: i32, %arg1: i32) -> (i32, i32, i32) {
    %c0_i32 = arith.constant 0 : i32
    %c0_i32_0 = arith.constant 0 : i32
    %c0_i32_1 = arith.constant 0 : i32
    return %arg1, %c0_i32, %c0_i32_0 : i32, i32, i32
  }
  func.func @transform_8(%arg0: i32, %arg1: i32) -> (i32, i32, i32) {
    %c0_i32 = arith.constant 0 : i32
    %c0_i32_0 = arith.constant 0 : i32
    %c0_i32_1 = arith.constant 0 : i32
    return %arg1, %c0_i32, %c0_i32_0 : i32, i32, i32
  }
  func.func @transform_9(%arg0: i32, %arg1: i32) -> (i32, i32, i32) {
    %c0_i32 = arith.constant 0 : i32
    %c0_i32_0 = arith.constant 0 : i32
    %c0_i32_1 = arith.constant 0 : i32
    return %arg1, %c0_i32, %c0_i32_0 : i32, i32, i32
  }
  func.func @transform_10(%arg0: i32, %arg1: i32) -> (i32, i32, i32) {
    %c0_i32 = arith.constant 0 : i32
    %c0_i32_0 = arith.constant 0 : i32
    %c0_i32_1 = arith.constant 0 : i32
    return %arg1, %c0_i32, %c0_i32_0 : i32, i32, i32
  }
  func.func @transform_11(%arg0: i32, %arg1: i32) -> (i32, i32) {
    %c0_i32 = arith.constant 0 : i32
    %c0_i32_0 = arith.constant 0 : i32
    %c0_i32_1 = arith.constant 0 : i32
    return %c0_i32, %c0_i32_0 : i32, i32
  }
  func.func @transform_12(%arg0: i32, %arg1: i32) -> (i32, i32) {
    %c0_i32 = arith.constant 0 : i32
    %c0_i32_0 = arith.constant 0 : i32
    %c0_i32_1 = arith.constant 0 : i32
    return %c0_i32, %c0_i32_0 : i32, i32
  }
  func.func @transform_13(%arg0: i32, %arg1: i32) -> (i32, i32, i32) {
    %c0_i32 = arith.constant 0 : i32
    %c0_i32_0 = arith.constant 0 : i32
    %c0_i32_1 = arith.constant 0 : i32
    return %arg0, %c0_i32, %c0_i32_0 : i32, i32, i32
  }
}

</mosaic_0001>

<bundles_post_ra>
// kernel: tpu_custom_call.1
= control target key start
LH: loop header
LB: loop body
LE: loop exit
PB: predicated region body
PF: predicated region fallthrough
CT: control target
= control target key end

     0   :  { %s3768_s0 = inlined_call_operand.hbm [shape: f32[2,8,32], index: 0, kind: input, shape index: {}]   ;;  %s3769_s1 = inlined_call_operand.vmem [shape: f32[2,1,32], index: 1, kind: input, shape index: {}]   ;;  %s3770_s2 = inlined_call_operand.hbm [shape: f32[2,1,32], index: 2, kind: input, shape index: {}]   ;;  %s3771_s3 = inlined_call_operand.vmem [shape: bf16[2,32,96], index: 3, kind: input, shape index: {}]   ;;  %s3772_s4 = inlined_call_operand.vmem [shape: bf16[2,32,32], index: 4, kind: input, shape index: {}]   ;;  %s3773_s5 = inlined_call_operand.hbm [shape: f32[2,1,32], index: 5, kind: input, shape index: {}]   ;;  %s3774_s6 = inlined_call_operand.hbm [shape: f32[2,1,32], index: 6, kind: input, shape index: {}]   ;;  %s3775_s7 = inlined_call_operand.vmem [shape: bf16[2,32,64], index: 7, kind: input, shape index: {}]   ;;  %s3776_s8 = inlined_call_operand.hbm [shape: f32[2,1,64], index: 8, kind: input, shape index: {}]   ;;  %s3777_s9 = inlined_call_operand.vmem [shape: bf16[2,64,32], index: 9, kind: input, shape index: {}]   ;;  %s3778_s10 = inlined_call_operand.vmem [shape: f32[2,1,32], index: 10, kind: input, shape index: {}]   ;;  %s3779_s11 = inlined_call_operand.vmem [shape: f32[1,32], index: 11, kind: input, shape index: {}]   ;;  %s3780_s12 = inlined_call_operand.vmem [shape: f32[1,32], index: 12, kind: input, shape index: {}]   ;;  %s3781_s13 = inlined_call_operand.hbm [shape: f32[2,8,32], index: 13, kind: output, shape index: {}]  }
   0x1   :  { %3803 = sst [smem:[#allocation30_spill]] %s3768_s0 }
   0x2   :  { %3804 = sst [smem:[#allocation31_spill]] %s3769_s1 }
   0x3   :  { %3805 = sst [smem:[#allocation32_spill]] %s3770_s2 }
   0x4   :  { %3806 = sst [smem:[#allocation33_spill]] %s3771_s3 }
   0x5   :  { %3807 = sst [smem:[#allocation34_spill]] %s3772_s4 }
   0x6   :  { %3808 = sst [smem:[#allocation35_spill]] %s3773_s5 }
   0x7   :  { %3809 = sst [smem:[#allocation36_spill]] %s3774_s6 }
   0x8   :  { %3810 = sst [smem:[#allocation37_spill]] %s3775_s7 }
   0x9   :  { %3811 = sst [smem:[#allocation38_spill]] %s3776_s8 }
   0xa   :  { %3812 = sst [smem:[#allocation39_spill]] %s3777_s9 }
   0xb   :  { %3813 = sst [smem:[#allocation40_spill]] %s3778_s10 }
   0xc   :  { %3814 = sst [smem:[#allocation41_spill]] %s3779_s11 }
   0xd   :  { %3815 = sst [smem:[#allocation42_spill]] %s3780_s12 }
   0xe   :  { %3816 = sst [smem:[#allocation43_spill]] %s3781_s13 }
   0xf   :  { %18 = vsyncpa [#allocation4], 0 }
  0x10   :  { %20 = vsyncpa [#allocation4 + $0x1], 0 }
  0x11   :  { %21 = vsyncpa [#allocation7], 0 }
  0x12   :  { %23 = vsyncpa [#allocation7 + $0x1], 0 }
  0x13   :  { %24 = vsyncpa [#allocation10], 0 }
  0x14   :  { %26 = vsyncpa [#allocation10 + $0x1], 0 }
  0x15   :  { %27 = vsyncpa [#allocation5], 0 }
  0x16   :  { %29 = vsyncpa [#allocation5 + $0x1], 0  ;;  %s3095_s25 = smov 0   ;;  %s3097_s26 = smov 0  }
  0x17   :  { %s3099_s27 = smov 0   ;;  %s3101_s28 = smov 0  }
  0x18   :  { %s3103_s29 = smov 0   ;;  %s3105_s30 = smov 0  }
  0x19   :  { %s3107_s14 = smov 0   ;;  %s3109_s15 = smov 0  }
  0x1a   :  { %s3111_s16 = smov 0   ;;  %s3113_s17 = smov 0  }
  0x1b   :  { %s3115_s18 = smov 0  }
  0x1c LB: > { %3817 = sst [smem:[#allocation17_spill]] %s2972_s27  ;;  %s44_s19 = sadd.s32 1, %s2996_s16  ;;  %s3004_s18 = sphi %s3115_s18, %s35_s18   ;;  %s3000_s17 = sphi %s3113_s17, %s3892_s17   ;;  %s2996_s16 = sphi %s3111_s16, %s3888_s16   ;;  %s2992_s15 = sphi %s3109_s15, %s3887_s15   ;;  %s2988_s14 = sphi %s3107_s14, %s3886_s14   ;;  %s2984_s30 = sphi %s3105_s30, %s3885_s30   ;;  %s2980_s29 = sphi %s3103_s29, %s3884_s29   ;;  %s2976_s28 = sphi %s3101_s28, %s3883_s28   ;;  %s2972_s27 = sphi %s3099_s27, %s3882_s27   ;;  %s2968_s26 = sphi %s3097_s26, %s3891_s26   ;;  %s2964_s25 = sphi %s3095_s25, %s3890_s25  }
  0x1d   : > { %3818 = sst [smem:[#allocation18_spill]] %s2980_s29  ;;  %p3787_p0 = scmp.eq.s32.totalorder %s3004_s18, 0 }
  0x1e   : > { %3819 = sst [smem:[#allocation19_spill]] %s2984_s30  ;;  %p3152_p1 = scmp.ge.s32.totalorder %s44_s19, 2 }
  0x1f   : > { %3820 = sst [smem:[#allocation20_spill]] %s2988_s14  ;;  %s106_s21 = sadd.s32 1, %s2972_s27 }
  0x20   : > { %3821 = sst [smem:[#allocation21_spill]] %s2992_s15  ;;  %p113_p2 = scmp.ne.s32.totalorder %s2972_s27, %s2968_s26 }
  0x21   : > { %3822 = sst [smem:[#allocation22_spill]] %s2996_s16  ;;  %s3894_s19 = smov (%p3152_p1, %s44_s19), 0 }
  0x22   : > { %3823 = sst [smem:[#allocation23_spill]] %s3000_s17  ;;  %p115_p4 = por %p113_p2, %p3787_p0 }
  0x23   : > { %s3824_s20 = scalar_select %p3152_p1, 1, 0 }
  0x24   : > { %3825 = sst [smem:[#allocation24_spill]] %s3894_s19  ;;  %s103_s22 = ssub.s32 %s2996_s16, %s3894_s19 }
  0x25   : > { %p3786_p5 = scmp.lt.s32.totalorder %s3004_s18, 4  ;;  %p104_p6 = scmp.eq.s32.totalorder %s103_s22, 0 }
  0x26   : > { %s3788_s23 = sand.u32 1, %s3004_s18   ;;  %s3172_s24 = sand.u32 1, %s2972_s27  }
  0x27   : > { %s3175_s13 = scalar_select %p104_p6, %s2972_s27, %s106_s21  }
  0x28   : > { %s3178_s15 = sshll.u32 %s2996_s16, 4  ;;  %s3827_s2 = sld [smem:[#allocation32_spill]] }
  0x29   : > { %3826 = sst [smem:[#allocation25_spill]] %s3175_s13  ;;  %s452_s19 = scalar_lea.vmem [#allocation6], %s3172_s24 }
  0x2a   : > { %s459_s22 = sshll.u32 %s452_s19, 4  ;;  %p3191_p7 = pnand %p3786_p5, %p115_p4  ;;  %s3187_s22 = int_to_ptr.vmem [resolvable:$true] %s459_s22 }
  0x2b   : > { %s3199_s11 = scalar_lea.sflag [#allocation7], %s3788_s23 }
  0x2c   : > { %s3828_s21 = scalar_select %p3191_p7, 1, 0 }
  0x2d   : > { %p3205_p11 = pneg %p3191_p7 }
  0x2e   : > { %s3184_s10 = scalar_lea.hbm %s3827_s2, %s3178_s15  ;;  %s2729_s27 = scalar_lea.hbm %s3827_s2, 32 }
  0x2f   : > { %s2724_s12 = scalar_lea.hbm %s3184_s10, 16  ;;  %p2730_p2 = scmp.lt.u32.totalorder %s3184_s10, %s3827_s2 }
  0x30   : > { %p2725_p10 = scmp.ne.s32.totalorder %s3184_s10, %s2724_s12  ;;  %p2731_p4 = scmp.lt.u32.totalorder %s2729_s27, %s2724_s12 }
  0x31   : > { %p2733_p5 = scmp.lt.u32.totalorder %s2724_s12, %s3184_s10 }
  0x32   : > { %p2727_p12 = pnand %p3205_p11, %p2725_p10  ;;  %p2732_p6 = por %p2731_p4, %p2730_p2 }
  0x34   : > { %p2728_p13 = pneg %p2727_p12  ;;  %p2734_p3 = por %p2733_p5, %p2732_p6 }
  0x36   : > { %p2735_p0 = pnand %p2734_p3, %p2728_p13 }
  0x38   : > { %2738 = shalt.err (!%p2735_p0)
}
  0x39   : > { %s2739_s23 = scalar_lea.vmem %s3187_s22, 16  ;;  %s3006_s13 = smov [#allocation6]  }
  0x3a   : > { %p2740_p10 = scmp.ne.s32.totalorder %s3187_s22, %s2739_s23  ;;  %s2744_s19 = sshll.u32 %s3006_s13, 4  ;;  %s2745_s19 = int_to_ptr.vmem [resolvable:$false] %s2744_s19 }
  0x3b   : > { %s2746_s7 = scalar_lea.vmem %s2745_s19, 32  ;;  %p2747_p9 = scmp.lt.s32.totalorder %s3187_s22, %s2745_s19 }
  0x3c   : > { %p2742_p12 = pnand %p2740_p10, %p3205_p11  ;;  %p2748_p1 = scmp.lt.s32.totalorder %s2746_s7, %s2739_s23 }
  0x3e   : > { %p2743_p8 = pneg %p2742_p12  ;;  %p2749_p2 = por %p2748_p1, %p2747_p9 }
  0x40   : > { %p2750_p4 = pnand %p2749_p2, %p2743_p8 }
  0x42   : > { %2753 = shalt.err (!%p2750_p4)
}
  0x43   : > { %2571 = dma.hbm_to_vmem [thread:$0]  (!%p3191_p7), %s3184_s10, 16, %s3187_s22, %s3199_s11  }
  0x44   : > { %p3830_p0 = scmp.lt.s32.totalorder %s3004_s18, 5  ;;  %p3831_p3 = scmp.ge.s32.totalorder %s3004_s18, 1 }
  0x45   : > { %s3833_s6 = sld [smem:[#allocation36_spill]]  ;;  %s502_s13 = scalar_lea.vmem [#allocation9], %s3172_s24 }
  0x46   : > { %p3233_p5 = pnand %p3831_p3, %p3830_p0  ;;  %s509_s19 = sshll.u32 %s502_s13, 4  ;;  %s510_s19 = int_to_ptr.vmem [resolvable:$true] %s509_s19 }
  0x47   : > { %s3834_s7 = sand.u32 1, %s3004_s18  }
  0x48   : > { %s3832_s9 = scalar_select %p3233_p5, 1, 0 }
  0x49   : > { %s3246_s10 = scalar_lea.sflag [#allocation10], %s3834_s7 }
  0x4b   : > { %s3241_s12 = scalar_lea.hbm %s3833_s6, %s3178_s15  ;;  %s2759_s27 = scalar_lea.hbm %s3833_s6, 32 }
  0x4c   : > { %s2754_s22 = scalar_lea.hbm %s3241_s12, 16  ;;  %p2760_p13 = scmp.lt.u32.totalorder %s3241_s12, %s3833_s6 }
  0x4d   : > { %p2755_p1 = scmp.ne.s32.totalorder %s3241_s12, %s2754_s22  ;;  %p2761_p6 = scmp.lt.u32.totalorder %s2759_s27, %s2754_s22 }
  0x4e   : > { %p2763_p12 = scmp.lt.u32.totalorder %s2754_s22, %s3241_s12 }
  0x4f   : > { %p2757_p8 = pnand %p2755_p1, %p3205_p11  ;;  %p2762_p10 = por %p2761_p6, %p2760_p13 }
  0x51   : > { %p2758_p9 = pneg %p2757_p8  ;;  %p2764_p2 = por %p2763_p12, %p2762_p10 }
  0x53   : > { %p2765_p4 = pnand %p2764_p2, %p2758_p9 }
  0x55   : > { %2768 = shalt.err (!%p2765_p4)
}
  0x56   : > { %s2769_s13 = scalar_lea.vmem %s510_s19, 16  ;;  %s3007_s7 = smov [#allocation9]  }
  0x57   : > { %p2770_p0 = scmp.ne.s32.totalorder %s510_s19, %s2769_s13  ;;  %s2774_s1 = sshll.u32 %s3007_s7, 4  ;;  %s2775_s1 = int_to_ptr.vmem [resolvable:$false] %s2774_s1 }
  0x58   : > { %s2776_s2 = scalar_lea.vmem %s2775_s1, 32  ;;  %p2777_p8 = scmp.lt.s32.totalorder %s510_s19, %s2775_s1 }
  0x59   : > { %p2772_p3 = pnand %p2770_p0, %p3205_p11  ;;  %p2778_p5 = scmp.lt.s32.totalorder %s2776_s2, %s2769_s13 }
  0x5b   : > { %p2773_p1 = pneg %p2772_p3  ;;  %p2779_p7 = por %p2778_p5, %p2777_p8 }
  0x5d   : > { %p2780_p6 = pnand %p2779_p7, %p2773_p1 }
  0x5f   : > { %2783 = shalt.err (!%p2780_p6)
}
  0x60   : > { %p3835_p13 = scmp.ne.s32.totalorder %s3828_s21, 0  ;;  %s3267_s1 = sadd.s32 4294967295, %s3004_s18  }
  0x61   : > { %s2371_s3 = sadd.s32 4294967294, %s3004_s18   ;;  %s47_s4 = sadd.s32 1, %s3000_s17 }
  0x62   : > { %2577 = dma.hbm_to_vmem [thread:$0]  (!%p3835_p13), %s3241_s12, 16, %s510_s19, %s3246_s10  }
  0x63   : > { %p3836_p7 = scmp.ne.s32.totalorder %s3824_s20, 0  ;;  %s54_s22 = sadd.s32 1, %s2984_s30 }
  0x64   : > { %p61_p5 = scmp.ne.s32.totalorder %s2984_s30, %s2980_s29  ;;  %p67_p10 = scmp.ne.s32.totalorder %s2980_s29, %s2976_s28 }
  0x65   : > { %s3896_s4 = smov (!%p3836_p7, %s47_s4), %s3000_s17  ;;  %p3837_p12 = scmp.eq.s32.totalorder %s3004_s18, 0 }
  0x66   : > { %p49_p9 = scmp.ge.s32.totalorder %s3896_s4, 2  ;;  %p68_p4 = scmp.eq.s32.totalorder %s3267_s1, 0 }
  0x67   : > { %p3281_p2 = por %p3837_p12, %p61_p5  ;;  %p3841_p3 = scmp.ne.s32.totalorder %s2968_s26, %s2964_s25 }
  0x68   : > { %s3898_s4 = smov (%p49_p9, %s3896_s4), 0  ;;  %p3291_p0 = por %p68_p4, %p67_p10 }
  0x69   : > { %3839 = sst [smem:[#allocation26_spill]] %s3898_s4  ;;  %p3298_p1 = por %p3841_p3, %p68_p4 }
  0x6a   : > { %s3840_s20 = scalar_select %p3291_p0, 1, 0 }
  0x6b   : > { %s3842_s19 = scalar_select %p3298_p1, 1, 0 }
  0x6c   : > { %s51_s27 = ssub.s32 %s3000_s17, %s3898_s4  ;;  %p393_p8 = scmp.eq.s32.totalorder %s3267_s1, 3 }
  0x6d   : > { %3843 = sst [smem:[#allocation27_spill]] %s3842_s19  ;;  %p52_p6 = scmp.eq.s32.totalorder %s51_s27, 0 }
  0x6e   : > { %p399_p7 = scmp.eq.s32.totalorder %s2371_s3, 3  ;;  %p3305_p9 = por %p393_p8, %p61_p5 }
  0x6f   : > { %s425_s13 = sand.u32 1, %s2984_s30   ;;  %s2375_s6 = sshll.u32 %s3000_s17, 7 }
  0x70   : > { %s3844_s23 = scalar_select %p3305_p9, 1, 0 }
  0x71   : > { %s3311_s7 = scalar_select %p52_p6, %s2984_s30, %s54_s22  }
  0x72   : > { %p3316_p12 = por %p399_p7, %p67_p10  ;;  %s2374_s25 = sshll.u32 %s425_s13, 3 }
  0x73   : > { %3845 = sst [smem:[#allocation28_spill]] %s3311_s7  ;;  %s3848_s0 = sld [smem:[#allocation30_spill]] }
  0x74   : > { %s3846_s2 = scalar_select %p3316_p12, 1, 0 }
  0x75   : > { %s429_s3 = scalar_lea.vmem [#allocation3], %s2374_s25  ;;  %p3849_p5 = scmp.lt.s32.totalorder %s3004_s18, 4 }
  0x76   : > { %3847 = sst [smem:[#allocation29_spill]] %s3846_s2  ;;  %s436_s27 = sshll.u32 %s429_s3, 4  ;;  %s3334_s27 = int_to_ptr.vmem [resolvable:$true] %s436_s27 }
  0x77   : > { %p3330_p4 = pnand %p3849_p5, %p3281_p2  ;;  %s3851_s5 = sld [smem:[#allocation35_spill]] }
  0x78   : > { %s426_s19 = scalar_lea.sflag [#allocation4], %s425_s13 }
  0x79   : > { %s3324_s4 = scalar_lea.hbm %s3848_s0, %s2375_s6  ;;  %p2786_p3 = pneg %p3330_p4 }
  0x7a   : > { %s2784_s7 = scalar_lea.hbm %s3324_s4, 128  ;;  %s2789_s3 = scalar_lea.hbm %s3848_s0, 256 }
  0x7b   : > { %p2785_p10 = scmp.ne.s32.totalorder %s3324_s4, %s2784_s7  ;;  %p2790_p6 = scmp.lt.u32.totalorder %s3324_s4, %s3848_s0 }
  0x7c   : > { %p2791_p7 = scmp.lt.u32.totalorder %s2789_s3, %s2784_s7  ;;  %p2793_p12 = scmp.lt.u32.totalorder %s2784_s7, %s3324_s4 }
  0x7d   : > { %s3340_s6 = scalar_lea.hbm %s3851_s5, %s3178_s15  ;;  %p2787_p2 = pnand %p2786_p3, %p2785_p10 }
  0x7e   : > { %p2792_p5 = por %p2791_p7, %p2790_p6 }
  0x7f   : > { %p2788_p8 = pneg %p2787_p2 }
  0x80   : > { %p2794_p9 = por %p2793_p12, %p2792_p5 }
  0x82   : > { %p2795_p1 = pnand %p2794_p9, %p2788_p8 }
  0x84   : > { %2798 = shalt.err (!%p2795_p1)
}
  0x85   : > { %s2799_s17 = scalar_lea.vmem %s3334_s27, 128  ;;  %s3008_s13 = smov [#allocation3]  }
  0x86   : > { %p2800_p10 = scmp.ne.s32.totalorder %s3334_s27, %s2799_s17  ;;  %s2804_s14 = sshll.u32 %s3008_s13, 4  ;;  %s2805_s14 = int_to_ptr.vmem [resolvable:$false] %s2804_s14 }
  0x87   : > { %s2806_s30 = scalar_lea.vmem %s2805_s14, 256  ;;  %p2807_p13 = scmp.lt.s32.totalorder %s3334_s27, %s2805_s14 }
  0x88   : > { %p2802_p2 = pnand %p2800_p10, %p2786_p3  ;;  %p2808_p6 = scmp.lt.s32.totalorder %s2806_s30, %s2799_s17 }
  0x8a   : > { %p2803_p0 = pneg %p2802_p2  ;;  %p2809_p7 = por %p2808_p6, %p2807_p13 }
  0x8c   : > { %p2810_p12 = pnand %p2809_p7, %p2803_p0 }
  0x8e   : > { %2813 = shalt.err (!%p2810_p12)
}
  0x8f   : > { %2568 = dma.hbm_to_vmem [thread:$0]  (!%p3330_p4), %s3324_s4, 128, %s3334_s27, %s426_s19  }
  0x90   : > { %s485_s7 = scalar_lea.vmem [#allocation8], %s3172_s24  ;;  %s3852_s8 = sld [smem:[#allocation38_spill]] }
  0x91   : > { %s492_s2 = sshll.u32 %s485_s7, 4  ;;  %s2814_s17 = scalar_lea.hbm %s3340_s6, 16  ;;  %s493_s2 = int_to_ptr.vmem [resolvable:$true] %s492_s2 }
  0x92   : > { %p2815_p13 = scmp.ne.s32.totalorder %s3340_s6, %s2814_s17  ;;  %s2819_s14 = scalar_lea.hbm %s3851_s5, 32 }
  0x93   : > { %p2820_p9 = scmp.lt.u32.totalorder %s3340_s6, %s3851_s5  ;;  %p2821_p4 = scmp.lt.u32.totalorder %s2819_s14, %s2814_s17 }
  0x94   : > { %p2817_p0 = pnand %p2815_p13, %p3205_p11  ;;  %p2823_p8 = scmp.lt.u32.totalorder %s2814_s17, %s3340_s6 }
  0x95   : > { %p2822_p3 = por %p2821_p4, %p2820_p9 }
  0x96   : > { %s3372_s3 = scalar_lea.hbm %s3852_s8, %s3178_s15  ;;  %p2818_p1 = pneg %p2817_p0 }
  0x97   : > { %p2824_p5 = por %p2823_p8, %p2822_p3 }
  0x99   : > { %p2825_p10 = pnand %p2824_p5, %p2818_p1 }
  0x9b   : > { %2828 = shalt.err (!%p2825_p10)
}
  0x9c   : > { %s2829_s15 = scalar_lea.vmem %s493_s2, 16  ;;  %s3009_s4 = smov [#allocation8]  }
  0x9d   : > { %p2830_p2 = scmp.ne.s32.totalorder %s493_s2, %s2829_s15  ;;  %s2834_s27 = sshll.u32 %s3009_s4, 4  ;;  %s2835_s27 = int_to_ptr.vmem [resolvable:$false] %s2834_s27 }
  0x9e   : > { %s2836_s19 = scalar_lea.vmem %s2835_s27, 32  ;;  %p2837_p12 = scmp.lt.s32.totalorder %s493_s2, %s2835_s27 }
  0x9f   : > { %p2832_p6 = pnand %p2830_p2, %p3205_p11  ;;  %p2838_p13 = scmp.lt.s32.totalorder %s2836_s19, %s2829_s15 }
  0xa1   : > { %p2833_p7 = pneg %p2832_p6  ;;  %p2839_p0 = por %p2838_p13, %p2837_p12 }
  0xa3   : > { %p2840_p4 = pnand %p2839_p0, %p2833_p7 }
  0xa5   : > { %2843 = shalt.err (!%p2840_p4)
}
  0xa6   : > { %p3853_p9 = scmp.ne.s32.totalorder %s3828_s21, 0  ;;  %s527_s0 = scalar_lea.vmem [#allocation11], %s3172_s24 }
  0xa7   : > { %s534_s7 = sshll.u32 %s527_s0, 4  ;;  %s2844_s12 = scalar_lea.hbm %s3372_s3, 16  ;;  %s535_s7 = int_to_ptr.vmem [resolvable:$true] %s534_s7 }
  0xa8   : > { %2574 = dma.hbm_to_vmem [thread:$0]  (!%p3853_p9), %s3340_s6, 16, %s493_s2, %s3199_s11  }
  0xa9   : > { %p2845_p1 = scmp.ne.s32.totalorder %s3372_s3, %s2844_s12  ;;  %s2849_s22 = scalar_lea.hbm %s3852_s8, 32 }
  0xaa   : > { %p2850_p5 = scmp.lt.u32.totalorder %s3372_s3, %s3852_s8  ;;  %p2851_p10 = scmp.lt.u32.totalorder %s2849_s22, %s2844_s12 }
  0xab   : > { %p2847_p3 = pnand %p2845_p1, %p3205_p11  ;;  %p2853_p6 = scmp.lt.u32.totalorder %s2844_s12, %s3372_s3 }
  0xac   : > { %p2852_p2 = por %p2851_p10, %p2850_p5 }
  0xad   : > { %p2848_p8 = pneg %p2847_p3 }
  0xae   : > { %p2854_p7 = por %p2853_p6, %p2852_p2 }
  0xb0   : > { %p2855_p12 = pnand %p2854_p7, %p2848_p8 }
  0xb2   : > { %2858 = shalt.err (!%p2855_p12)
}
  0xb3   : > { %s2859_s24 = scalar_lea.vmem %s535_s7, 16  ;;  %s3010_s11 = smov [#allocation11]  }
  0xb4   : > { %p2860_p13 = scmp.ne.s32.totalorder %s535_s7, %s2859_s24  ;;  %s2864_s6 = sshll.u32 %s3010_s11, 4  ;;  %s2865_s6 = int_to_ptr.vmem [resolvable:$false] %s2864_s6 }
  0xb5   : > { %s2866_s2 = scalar_lea.vmem %s2865_s6, 32  ;;  %p2867_p1 = scmp.lt.s32.totalorder %s535_s7, %s2865_s6 }
  0xb6   : > { %p2862_p0 = pnand %p2860_p13, %p3205_p11  ;;  %p2868_p3 = scmp.lt.s32.totalorder %s2866_s2, %s2859_s24 }
  0xb8   : > { %p2863_p4 = pneg %p2862_p0  ;;  %p2869_p9 = por %p2868_p3, %p2867_p1 }
  0xba   : > { %p2870_p5 = pnand %p2869_p9, %p2863_p4 }
  0xbc   : > { %2873 = shalt.err (!%p2870_p5)
}
  0xbd   : > { %p3854_p10 = scmp.ne.s32.totalorder %s3828_s21, 0  ;;  %p3855_p8 = scmp.ne.s32.totalorder %s3832_s9, 0 }
  0xbe   : > { %s3414_s16 = sand.u32 (!%p3855_p8), 1, %s2980_s29   ;;  %p3856_p11 = scmp.ne.s32.totalorder (!%p3855_p8), %s3840_s20, 0 }
  0xbf   : > { %2580 = dma.hbm_to_vmem [thread:$0]  (!%p3854_p10), %s3372_s3, 16, %s535_s7, %s3246_s10  }
  0xc0   : > { %557 = sbr.rel (%p3855_p8) target bundleno = 3307 (0xceb), region = 72  ;;  %s2381_s30 = sshll.u32 (!%p3855_p8), %s3414_s16, 3 }
  0xc1   : > { %s560_s15 = scalar_lea.sflag (!%p3855_p8), [#allocation4], %s3414_s16  ;;  %s563_s4 = scalar_lea.vmem (!%p3855_p8), [#allocation3], %s2381_s30 }
  0xc7   : > { %2947 = dma.done.wait (%p3856_p11), %s560_s15, 128  }
  0xc8   : > { %2949 = vsyncadd (%p3856_p11), %s560_s15, 4294967168  ;;  %s3857_s21 = sld [smem:[#allocation27_spill]]  ;;  %s568_s10 = sand.u32 1, %s3267_s1  }
  0xc9   : > { %s3424_s9 = sand.u32 1, %s2968_s26   ;;  %s569_s3 = scalar_lea.sflag [#allocation7], %s568_s10 }
  0xce   : > { %p3858_p9 = scmp.ne.s32.totalorder %s3857_s21, 0 }
  0xd0   : > { %2951 = dma.done.wait (%p3858_p9), %s569_s3, 32  }
  0xd1   : > { %2953 = vsyncadd (%p3858_p9), %s569_s3, 4294967264  ;;  %s585_s20 = scalar_lea.sflag [#allocation10], %s568_s10 }
  0xd2   : > { %2955 = dma.done.wait (%p3858_p9), %s585_s20, 32  }
  0xd3   : > { %2957 = vsyncadd (%p3858_p9), %s585_s20, 4294967264  ;;  %s3859_s1 = sld [smem:[#allocation20_spill]]  ;;  %s3861_s11 = sld [smem:[#allocation33_spill]] }
  0xd4   : > { %s3862_s21 = sld [smem:[#allocation34_spill]]  ;;  %s3863_s0 = sld [smem:[#allocation37_spill]] }
  0xd5   : > { %s3864_s5 = sld [smem:[#allocation39_spill]]  ;;  %s3865_s14 = sld [smem:[#allocation40_spill]] }
  0xd6   : > { %s3470_s29 = scalar_lea.vmem [#allocation12], %s2381_s30 }
  0xd9   : > { %p680_p2 = scmp.lt.s32.totalorder %s3859_s1, 1  ;;  %p2391_p6 = scmp.ne.s32.totalorder %s3859_s1, 0 }
  0xda   : > { %v711_v0 = vld [vmem:[%s563_s4] sm:$0xff] (!%p2391_p6)  ;;  %vm712_vm0 = vcmask (!%p2391_p6), 261120  }
  0xdb   : > { %s3439_s7 = scalar_select %p680_p2, %s3859_s1, 1 }
  0xdc   : > { %710 = sbr.rel (%p2391_p6) target bundleno = 227 (0xe3), region = 96  ;;  %713 = vst.msk [vmem:[#allocation2] sm:$0xff] (!%p2391_p6), %vm712_vm0, %v711_v0 }
  0xdd   : > { %s2435_s13 = sshll.u32 %s3439_s7, 4  ;;  %s2438_s12 = sshll.u32 %s3439_s7, 5 }
  0xde   : > { %s687_s6 = scalar_lea.vmem %s3861_s11, %s2435_s13  ;;  %s3452_s10 = scalar_lea.vmem %s3862_s21, %s2435_s13 }
  0xdf   : > { %s3457_s19 = scalar_lea.vmem %s3863_s0, %s2435_s13  ;;  %s3463_s17 = scalar_lea.vmem %s3864_s5, %s2438_s12 }
  0xe0   : > { %s705_s24 = scalar_lea.vmem %s3865_s14, %s3439_s7  ;;  %s595_s11 = scalar_lea.vmem [#allocation11], %s3424_s9 }
  0xe3 PF: > { %v3473_v1 = vld [vmem:[#allocation2] sm:$0xff]  ;;  %vm717_vm1 = vcmask 261120   ;;  %v3011_v9 = vmov 0.0   ;;  %vm3012_vm2 = vmmov 0   ;;  %v2689_v10 = vld [vmem:[%s687_s6 + $0x8] sm:$0xff]   ;;  %s3866_s30 = sld [smem:[#allocation31_spill]]  ;;  %v821_v30 = vlaneseq }
  0xe4   : > { %v718_v2 = vsel %vm717_vm1, %v3473_v1, 0.0  ;;  %v2688_v8 = vld [vmem:[%s687_s6] sm:$0xff]   ;;  %2469 = vmatprep.subr.bf16.mxu0 %v3011_v9  ;;  %2473 = vmatprep.mubr.msk.bf16.mxu0 %vm3012_vm2, %v3011_v9  ;;  %s3868_s27 = scalar_lea.vmem [#allocation6], %s3424_s9  ;;  %s3013_s0 = smov 104   ;;  %v3017_v28 = vmov 1983009808  }
  0xe5   : > { %719 = vadd.xlane.f32.xlu0 %v718_v2  ;;  %2470 = vmatpush3.bf16.msra.mxu0 %v2688_v8  ;;  %v2393_v17 = vld [vmem:[%s3868_s27] ss:$0 sm:$0xff]  ;;  %s3014_s1 = smov 120   ;;  %s3015_s22 = smov 112   ;;  %v819_v29 = vunpack.c.l.s4 %v3017_v28  ;;  %v822_v32 = vshrl.u32 %v821_v30, 7  ;;  %vm1260_vm3 = vcmask 64512  }
  0xe6   : > { %2477 = vmatprep.subr.bf16.mxu1 %v3011_v9  ;;  %2471 = vmatprep.subr.bf16.mxu0 %v3011_v9  ;;  %s3016_s13 = smov 96   ;;  %v3018_v34 = vmov 1934713408   ;;  %s3019_s6 = smov 64   ;;  %vm1496_vm4 = vcmask 1043456   ;;  %vm1827_vm5 = vcmask 130048  }
  0xe7   : > { %2479 = vmatprep.mubr.msk.bf16.mxu1 %vm3012_vm2, %v3011_v9  ;;  %v820_v31 = vunpack.c.0.s8 %v819_v29  ;;  %v851_v35 = vunpack.c.l.s4 %v3018_v34  ;;  %s3020_s2 = smov 16   ;;  %s3021_s15 = smov 8   ;;  %vm1829_vm6 = vcmask 195584   ;;  %vm2055_vm8 = vcmask 523264  }
  0xe8   : > { %s3022_s21 = smov 24   ;;  %s3870_s3 = scalar_lea.vmem [#allocation9], %s3424_s9 }
  0xe9   : > { %2472 = vmatpush3.bf16.msra.mxu0 %v2689_v10  ;;  %s3867_s4 = scalar_lea.vmem %s3866_s30, %s3439_s7  ;;  %v3516_v38 = vsub.s32 %v820_v31, %v822_v32  ;;  %v852_v42 = vunpack.c.0.s8 %v851_v35  ;;  %s3872_s12 = sld [smem:[#allocation20_spill]] }
  0xea   : > { %2483 = vmatprep.subr.bf16.mxu0 %v3011_v9  ;;  %v2392_v15 = vld [vmem:[%s3867_s4] ss:$0 sm:$0xff] }
  0xeb   : > { %v3526_v48 = vsub.s32 %v852_v42, %v822_v32 }
  0xef   : > { %p2428_p7 = scmp.ne.s32.totalorder %s3872_s12, 1 }
 0x172   : > { %v720_v3 = vpop.xlane.xlu0 %719 }
 0x173   : > { %v722_v4 = vmul.f32 0.03125, %v720_v3 }
 0x175   : > { %v723_v5 = vsub.f32 %v3473_v1, %v722_v4 }
 0x177   : > { %v724_v6 = vmul.f32 %v723_v5, %v723_v5 }
 0x179   : > { %v725_v7 = vsel %vm717_vm1, %v724_v6, 0.0 }
 0x17a   : > { %726 = vadd.xlane.f32.xlu0 %v725_v7 }
 0x207   : > { %v727_v11 = vpop.xlane.xlu0 %726 }
 0x208   : > { %v728_v12 = vmul.f32 0.03125, %v727_v11 }
 0x20a   : > { %v729_v13 = vadd.f32 1e-05, %v728_v12 }
 0x20c   : > { %2698 = vrsqrt.f32 %v729_v13 }
 0x216   : > { %v2699_v14 = vpop.eup %2698 }
 0x217   : > { %v731_v16 = vmul.f32 %v2699_v14, %v723_v5 }
 0x219   : > { %v738_v18 = vmul.f32 %v2392_v15, %v731_v16 }
 0x21b   : > { %v745_v19 = vadd.f32 %v2393_v17, %v738_v18 }
 0x21d   : > { %v746_v20 = vpack.c.bf16 %v745_v19, %v745_v19 }
 0x21f   : > { %2474 = vmatmul.mubr.msk.bf16.vlgmr.msra.gmra.mrb[0].mxu0 %vm717_vm1, %v746_v20 }
 0x220   : > { %2485 = vmatprep.mubr.msk.bf16.mxu0 %vm3012_vm2, %v3011_v9 }
 0x2f2   : > { %v3497_v21 = vpop.f32.mrb[0].mxu0 }
 0x2f3   : > { %813 = vrot.lane.b32.xlu0 %v3497_v21, %s3013_s0  ;;  %807 = vrot.lane.b32.xlu1 %v3497_v21, %s3014_s1  ;;  %v2475_v22 = vpop.f32.mrb[1].mxu0 }
 0x2f4   : > { %v803_v23 = vpop.f32.mrb[2].mxu0 }
 0x2f5   : > { %v2476_v24 = vpop.f32.mrb[3].mxu0 }
 0x2f7   : > { %810 = vrot.lane.b32.xlu1 %v3497_v21, %s3015_s22 }
 0x2fb   : > { %956 = vrot.lane.b32.xlu1 %v3497_v21, %s3016_s13 }
 0x365   : > { %v3503_v25 = vpop.permute.xlu1 %807  ;;  %v3509_v27 = vpop.permute.xlu0 %813 }
 0x366   : > { %958 = vrot.lane.b32.xlu1 %v3503_v25, %s3016_s13  ;;  %v832_v39 = vcombine.low %v3503_v25, %v3509_v27  ;;  %v833_v40 = vcombine.high %v3503_v25, %v3509_v27 }
 0x368   : > { %v840_v45 = vrot.slane %v832_v39, %v3516_v38  ;;  %v847_v46 = vrot.slane %v833_v40, %v3516_v38 }
 0x369   : > { %v3506_v26 = vpop.permute.xlu1 %810 }
 0x36a   : > { %960 = vrot.lane.b32.xlu1 %v3506_v26, %s3016_s13  ;;  %v816_v36 = vcombine.low %v3497_v21, %v3506_v26  ;;  %v817_v37 = vcombine.high %v3497_v21, %v3506_v26 }
 0x36c   : > { %v824_v43 = vrot.slane %v816_v36, %v3516_v38  ;;  %v831_v44 = vrot.slane %v817_v37, %v3516_v38 }
 0x36d   : > { %v957_v33 = vpop.permute.xlu1 %956 }
 0x36e   : > { %962 = vrot.lane.b32.xlu1 %v3509_v27, %s3016_s13  ;;  %v848_v49 = vcombine.low %v824_v43, %v840_v45  ;;  %v849_v50 = vcombine.high %v824_v43, %v840_v45  ;;  %v864_v51 = vcombine.low %v831_v44, %v847_v46  ;;  %v865_v52 = vcombine.high %v831_v44, %v847_v46 }
 0x370   : > { %v856_v58 = vrot.slane %v848_v49, %v3526_v48  ;;  %v863_v59 = vrot.slane %v849_v50, %v3526_v48  ;;  %v872_v60 = vrot.slane %v864_v51, %v3526_v48  ;;  %v879_v61 = vrot.slane %v865_v52, %v3526_v48 }
 0x372   : > { %v884_v7 = vcombine.low %v856_v58, %v863_v59  ;;  %v2397_v8 = vcombine.high %v856_v58, %v863_v59  ;;  %v900_v10 = vcombine.low %v872_v60, %v879_v61  ;;  %v2398_v11 = vcombine.high %v872_v60, %v879_v61 }
 0x374   : > { %v891_v20 = vrot.slane %v884_v7, %v3516_v38  ;;  %v899_v22 = vrot.slane %v2397_v8, %v3516_v38  ;;  %v907_v23 = vrot.slane %v900_v10, %v3516_v38  ;;  %v915_v24 = vrot.slane %v2398_v11, %v3516_v38 }
 0x376   : > { %v916_v39 = vcombine.low %v891_v20, %v899_v22  ;;  %v932_v40 = vcombine.low %v907_v23, %v915_v24 }
 0x378   : > { %v940_v49 = vrot.slane %v932_v40, %v3526_v48 }
 0x3d8   : > { %v959_v41 = vpop.permute.xlu1 %958 }
 0x3dc   : > { %v961_v47 = vpop.permute.xlu1 %960 }
 0x3dd   : > { %v968_v53 = vcombine.low %v957_v33, %v961_v47  ;;  %v969_v54 = vcombine.high %v957_v33, %v961_v47  ;;  %v924_v47 = vrot.slane %v916_v39, %v3526_v48 }
 0x3df   : > { %v976_v62 = vrot.slane %v968_v53, %v3516_v38  ;;  %v983_v63 = vrot.slane %v969_v54, %v3516_v38  ;;  %v917_v54 = vcombine.high %v891_v20, %v899_v22 }
 0x3e0   : > { %v963_v55 = vpop.permute.xlu1 %962 }
 0x3e1   : > { %v984_v56 = vcombine.low %v959_v41, %v963_v55  ;;  %v985_v57 = vcombine.high %v959_v41, %v963_v55  ;;  %v933_v55 = vcombine.high %v907_v23, %v915_v24 }
 0x3e3   : > { %v992_v0 = vrot.slane %v984_v56, %v3516_v38  ;;  %v999_v2 = vrot.slane %v985_v57, %v3516_v38  ;;  %v948_v56 = vcombine.low %v924_v47, %v940_v49  ;;  %v949_v57 = vcombine.high %v924_v47, %v940_v49 }
 0x3e5   : > { %v1000_v3 = vcombine.low %v976_v62, %v992_v0  ;;  %v1001_v4 = vcombine.high %v976_v62, %v992_v0  ;;  %v1016_v5 = vcombine.low %v983_v63, %v999_v2  ;;  %v1017_v6 = vcombine.high %v983_v63, %v999_v2 }
 0x3e6   : > { %v952_v60 = vpack.c.bf16 %v948_v56, %v948_v56  ;;  %v953_v61 = vpack.c.bf16 %v949_v57, %v949_v57  ;;  %v931_v62 = vrot.slane %v917_v54, %v3526_v48  ;;  %v947_v63 = vrot.slane %v933_v55, %v3526_v48 }
 0x3e7   : > { %v1008_v12 = vrot.slane %v1000_v3, %v3526_v48  ;;  %v1015_v13 = vrot.slane %v1001_v4, %v3526_v48  ;;  %v1024_v14 = vrot.slane %v1016_v5, %v3526_v48  ;;  %v1031_v15 = vrot.slane %v1017_v6, %v3526_v48 }
 0x3e8   : > { %v950_v3 = vcombine.low %v931_v62, %v947_v63  ;;  %v951_v4 = vcombine.high %v931_v62, %v947_v63 }
 0x3e9   : > { %v1036_v16 = vcombine.low %v1008_v12, %v1015_v13  ;;  %v2399_v17 = vcombine.high %v1008_v12, %v1015_v13  ;;  %v1052_v18 = vcombine.low %v1024_v14, %v1031_v15  ;;  %v2400_v19 = vcombine.high %v1024_v14, %v1031_v15 }
 0x3ea   : > { %v954_v5 = vpack.c.bf16 %v950_v3, %v950_v3  ;;  %v955_v6 = vpack.c.bf16 %v951_v4, %v951_v4 }
 0x3eb   : > { %v1043_v28 = vrot.slane %v1036_v16, %v3516_v38  ;;  %v1051_v29 = vrot.slane %v2399_v17, %v3516_v38  ;;  %v1059_v30 = vrot.slane %v1052_v18, %v3516_v38  ;;  %v1067_v31 = vrot.slane %v2400_v19, %v3516_v38 }
 0x3ed   : > { %v1068_v32 = vcombine.low %v1043_v28, %v1051_v29  ;;  %v1084_v33 = vcombine.low %v1059_v30, %v1067_v31  ;;  %v1069_v34 = vcombine.high %v1043_v28, %v1051_v29  ;;  %v1085_v35 = vcombine.high %v1059_v30, %v1067_v31 }
 0x3ef   : > { %v1076_v36 = vrot.slane %v1068_v32, %v3526_v48  ;;  %v1092_v37 = vrot.slane %v1084_v33, %v3526_v48  ;;  %v1083_v43 = vrot.slane %v1069_v34, %v3526_v48  ;;  %v1099_v44 = vrot.slane %v1085_v35, %v3526_v48 }
 0x3f1   : > { %v1100_v41 = vcombine.low %v1076_v36, %v1092_v37  ;;  %v1101_v42 = vcombine.high %v1076_v36, %v1092_v37  ;;  %v1102_v52 = vcombine.low %v1083_v43, %v1099_v44  ;;  %v1103_v53 = vcombine.high %v1083_v43, %v1099_v44 }
 0x3f3   : > { %v1104_v45 = vpack.c.bf16 %v1100_v41, %v1100_v41  ;;  %v1105_v46 = vpack.c.bf16 %v1101_v42, %v1101_v42  ;;  %v1106_v58 = vpack.c.bf16 %v1102_v52, %v1102_v52  ;;  %v1107_v59 = vpack.c.bf16 %v1103_v53, %v1103_v53 }
 0x3f5   : > { %v1265_v50 = vsel %vm1260_vm3, %v1104_v45, 0  ;;  %v1311_v51 = vsel %vm1260_vm3, %v1105_v46, 0  ;;  %v1357_v0 = vsel %vm1260_vm3, %v1106_v58, 0  ;;  %v1403_v2 = vsel %vm1260_vm3, %v1107_v59, 0 }
 0x3f6   : > { %2478 = vmatpush3.bf16.xpose.msra.mxu1 %v1265_v50  ;;  %2484 = vmatpush3.bf16.xpose.msra.mxu0 %v1311_v51 }
 0x3f7   : > { %2489 = vmatprep.subr.bf16.mxu1 %v3011_v9  ;;  %2495 = vmatprep.subr.bf16.mxu0 %v3011_v9 }
 0x3fd   : > { %2480 = vmatmul.mubr.msk.bf16.vlgmr.msra.gmra.mrb[0].mxu1 %vm1260_vm3, %v952_v60  ;;  %2486 = vmatmul.mubr.msk.bf16.vlgmr.msra.gmra.mrb[4].mxu0 %vm1260_vm3, %v953_v61 }
 0x3fe   : > { %2490 = vmatpush3.bf16.xpose.msra.mxu1 %v1357_v0  ;;  %2496 = vmatpush3.bf16.xpose.msra.mxu0 %v1403_v2 }
 0x3ff   : > { %2491 = vmatprep.mubr.msk.bf16.mxu1 %vm3012_vm2, %v3011_v9  ;;  %2497 = vmatprep.mubr.msk.bf16.mxu0 %vm3012_vm2, %v3011_v9 }
 0x400   : > { %2501 = vmatprep.subr.bf16.mxu1 %v3011_v9  ;;  %2507 = vmatprep.subr.bf16.mxu0 %v3011_v9 }
 0x405   : > { %2492 = vmatmul.mubr.msk.bf16.vlgmr.msra.gmra.mrb[4].mxu1 %vm1260_vm3, %v954_v5  ;;  %2498 = vmatmul.mubr.msk.bf16.vlgmr.msra.gmra.mrb[8].mxu0 %vm1260_vm3, %v955_v6 }
 0x406   : > { %2503 = vmatprep.mubr.msk.bf16.mxu1 %vm3012_vm2, %v3011_v9  ;;  %2509 = vmatprep.mubr.msk.bf16.mxu0 %vm3012_vm2, %v3011_v9 }
 0x4d0   : > { %v1301_v7 = vpop.f32.mrb[0].mxu1  ;;  %v1347_v8 = vpop.f32.mrb[4].mxu0 }
 0x4d1   : > { %v2481_v10 = vpop.f32.mrb[1].mxu1  ;;  %v2487_v11 = vpop.f32.mrb[5].mxu0  ;;  %v1445_v12 = vsel %vm1260_vm3, %v1301_v7, -inf  ;;  %v1448_v13 = vsel %vm1260_vm3, %v1347_v8, -inf }
 0x4d2   : > { %1446 = vmax.xlane.f32.xlu1 %v1445_v12  ;;  %v1304_v14 = vpop.f32.mrb[2].mxu1  ;;  %1449 = vmax.xlane.f32.xlu0 %v1448_v13  ;;  %v1350_v15 = vpop.f32.mrb[6].mxu0 }
 0x4d3   : > { %v2482_v16 = vpop.f32.mrb[3].mxu1  ;;  %v2488_v17 = vpop.f32.mrb[7].mxu0 }
 0x4d8   : > { %v1393_v18 = vpop.f32.mrb[4].mxu1  ;;  %v1439_v19 = vpop.f32.mrb[8].mxu0 }
 0x4d9   : > { %v2493_v20 = vpop.f32.mrb[5].mxu1  ;;  %v2499_v22 = vpop.f32.mrb[9].mxu0  ;;  %v1451_v23 = vsel %vm1260_vm3, %v1393_v18, -inf  ;;  %v1454_v24 = vsel %vm1260_vm3, %v1439_v19, -inf }
 0x4da   : > { %1452 = vmax.xlane.f32.xlu1 %v1451_v23  ;;  %v1396_v28 = vpop.f32.mrb[6].mxu1  ;;  %1455 = vmax.xlane.f32.xlu0 %v1454_v24  ;;  %v1442_v29 = vpop.f32.mrb[10].mxu0 }
 0x4db   : > { %v2494_v30 = vpop.f32.mrb[7].mxu1  ;;  %v2500_v31 = vpop.f32.mrb[11].mxu0 }
 0x4eb   : > { %1108 = vrot.lane.b32.xlu1 %v3497_v21, %s3019_s6 }
 0x55f   : > { %v1447_v32 = vpop.xlane.xlu1 %1446  ;;  %v1450_v33 = vpop.xlane.xlu0 %1449 }
 0x560   : > { %v1457_v34 = vsub.f32 %v1301_v7, %v1447_v32  ;;  %v1458_v35 = vsub.f32 %v1347_v8, %v1450_v33 }
 0x562   : > { %v1461_v36 = vmul.f32 1.442695, %v1457_v34  ;;  %v1463_v37 = vmul.f32 1.442695, %v1458_v35 }
 0x564   : > { %2700 = vpow2.f32 %v1461_v36 }
 0x565   : > { %2702 = vpow2.f32 %v1463_v37 }
 0x567   : > { %v1453_v21 = vpop.xlane.xlu1 %1452  ;;  %v1456_v44 = vpop.xlane.xlu0 %1455 }
 0x568   : > { %v1459_v43 = vsub.f32 %v1393_v18, %v1453_v21  ;;  %v1460_v45 = vsub.f32 %v1439_v19, %v1456_v44 }
 0x56a   : > { %v1465_v46 = vmul.f32 1.442695, %v1459_v43  ;;  %v1467_v47 = vmul.f32 1.442695, %v1460_v45 }
 0x56c   : > { %2704 = vpow2.f32 %v1465_v46 }
 0x56d   : > { %2706 = vpow2.f32 %v1467_v47 }
 0x56e   : > { %v3581_v39 = vpop.eup %2700 }
 0x56f   : > { %v3583_v40 = vpop.eup %2702  ;;  %v1469_v41 = vsel %vm1260_vm3, %v3581_v39, 0.0 }
 0x570   : > { %1470 = vadd.xlane.f32.xlu1 %v1469_v41  ;;  %v1472_v42 = vsel %vm1260_vm3, %v3583_v40, 0.0 }
 0x571   : > { %1473 = vadd.xlane.f32.xlu0 %v1472_v42 }
 0x576   : > { %v3592_v49 = vpop.eup %2704 }
 0x577   : > { %v3594_v50 = vpop.eup %2706  ;;  %v1475_v51 = vsel %vm1260_vm3, %v3592_v49, 0.0 }
 0x581   : > { %1112 = vrot.lane.b32.xlu1 %v3506_v26, %s3019_s6  ;;  %v1478_v26 = vsel %vm1260_vm3, %v3594_v50, 0.0 }
 0x585   : > { %1114 = vrot.lane.b32.xlu1 %v3509_v27, %s3019_s6 }
 0x587   : > { %1110 = vrot.lane.b32.xlu0 %v3503_v25, %s3019_s6  ;;  %v1109_v25 = vpop.permute.xlu1 %1108 }
 0x5a6   : > { %1476 = vadd.xlane.f32.xlu0 %v1475_v51 }
 0x5a9   : > { %1479 = vadd.xlane.f32.xlu1 %v1478_v26 }
 0x5fd   : > { %v1471_v27 = vpop.xlane.xlu1 %1470 }
 0x5fe   : > { %v1474_v52 = vpop.xlane.xlu0 %1473  ;;  %2708 = vrcp.f32 %v1471_v27 }
 0x5ff   : > { %2710 = vrcp.f32 %v1474_v52 }
 0x601   : > { %v1113_v53 = vpop.permute.xlu1 %1112 }
 0x602   : > { %v1120_v54 = vcombine.low %v1109_v25, %v1113_v53  ;;  %v1121_v55 = vcombine.high %v1109_v25, %v1113_v53  ;;  %v1111_v56 = vpop.permute.xlu0 %1110 }
 0x604   : > { %v1128_v60 = vrot.slane %v1120_v54, %v3516_v38  ;;  %v1135_v61 = vrot.slane %v1121_v55, %v3516_v38 }
 0x605   : > { %v1115_v57 = vpop.permute.xlu1 %1114 }
 0x606   : > { %v1136_v58 = vcombine.low %v1111_v56, %v1115_v57  ;;  %v1137_v59 = vcombine.high %v1111_v56, %v1115_v57  ;;  %v2690_v56 = vld [vmem:[%s3452_s10] sm:$0xff]  }
 0x608   : > { %v1144_v62 = vrot.slane %v1136_v58, %v3516_v38  ;;  %v1151_v63 = vrot.slane %v1137_v59, %v3516_v38  ;;  %v2709_v28 = vpop.eup %2708 }
 0x609   : > { %v2711_v31 = vpop.eup %2710  ;;  %v1485_v36 = vmul.f32 %v2709_v28, %v3581_v39 }
 0x60a   : > { %v1152_v0 = vcombine.low %v1128_v60, %v1144_v62  ;;  %v1153_v2 = vcombine.high %v1128_v60, %v1144_v62  ;;  %v1168_v3 = vcombine.low %v1135_v61, %v1151_v63  ;;  %v1169_v4 = vcombine.high %v1135_v61, %v1151_v63 }
 0x60b   : > { %v1486_v37 = vmul.f32 %v2711_v31, %v3583_v40  ;;  %v1489_v46 = vpack.c.bf16 %v1485_v36, %v1485_v36 }
 0x60c   : > { %v1160_v5 = vrot.slane %v1152_v0, %v3526_v48  ;;  %v1167_v6 = vrot.slane %v1153_v2, %v3526_v48  ;;  %v1176_v7 = vrot.slane %v1168_v3, %v3526_v48  ;;  %v1183_v8 = vrot.slane %v1169_v4, %v3526_v48 }
 0x60d   : > { %v1490_v47 = vpack.c.bf16 %v1486_v37, %v1486_v37 }
 0x60e   : > { %v1188_v10 = vcombine.low %v1160_v5, %v1167_v6  ;;  %v2401_v11 = vcombine.high %v1160_v5, %v1167_v6  ;;  %v1204_v12 = vcombine.low %v1176_v7, %v1183_v8  ;;  %v2402_v13 = vcombine.high %v1176_v7, %v1183_v8 }
 0x610   : > { %v1195_v14 = vrot.slane %v1188_v10, %v3516_v38  ;;  %v1203_v15 = vrot.slane %v2401_v11, %v3516_v38  ;;  %v1211_v16 = vrot.slane %v1204_v12, %v3516_v38  ;;  %v1219_v17 = vrot.slane %v2402_v13, %v3516_v38 }
 0x612   : > { %v1220_v18 = vcombine.low %v1195_v14, %v1203_v15  ;;  %v1221_v19 = vcombine.high %v1195_v14, %v1203_v15  ;;  %v1236_v20 = vcombine.low %v1211_v16, %v1219_v17  ;;  %v1237_v22 = vcombine.high %v1211_v16, %v1219_v17 }
 0x614   : > { %v1228_v23 = vrot.slane %v1220_v18, %v3526_v48  ;;  %v1235_v24 = vrot.slane %v1221_v19, %v3526_v48  ;;  %v1244_v29 = vrot.slane %v1236_v20, %v3526_v48  ;;  %v1251_v30 = vrot.slane %v1237_v22, %v3526_v48  ;;  %v2691_v22 = vld [vmem:[%s3452_s10 + $0x8] sm:$0xff]   ;;  %s3869_s10 = scalar_lea.vmem [#allocation8], %s3424_s9 }
 0x616   : > { %v1252_v32 = vcombine.low %v1228_v23, %v1244_v29  ;;  %v1253_v33 = vcombine.high %v1228_v23, %v1244_v29  ;;  %v1254_v34 = vcombine.low %v1235_v24, %v1251_v30  ;;  %v1255_v35 = vcombine.high %v1235_v24, %v1251_v30 }
 0x618   : > { %v1256_v41 = vpack.c.bf16 %v1252_v32, %v1252_v32  ;;  %v1257_v42 = vpack.c.bf16 %v1253_v33, %v1253_v33  ;;  %v1258_v44 = vpack.c.bf16 %v1254_v34, %v1254_v34  ;;  %v1259_v45 = vpack.c.bf16 %v1255_v35, %v1255_v35 }
 0x61a   : > { %v1498_v21 = vsel %vm1496_vm4, %v1256_v41, 0  ;;  %v1544_v43 = vsel %vm1496_vm4, %v1257_v42, 0  ;;  %v1590_v39 = vsel %vm1496_vm4, %v1258_v44, 0  ;;  %v1636_v40 = vsel %vm1496_vm4, %v1259_v45, 0 }
 0x61b   : > { %2502 = vmatpush3.bf16.msra.mxu1 %v1498_v21  ;;  %2508 = vmatpush3.bf16.msra.mxu0 %v1544_v43 }
 0x61c   : > { %2513 = vmatprep.subr.bf16.mxu1 %v3011_v9  ;;  %2519 = vmatprep.subr.bf16.mxu0 %v3011_v9 }
 0x61e   : > { %2504 = vmatmul.mubr.msk.bf16.vlgmr.msra.gmra.mrb[8].mxu1 %vm1260_vm3, %v1489_v46  ;;  %2510 = vmatmul.mubr.msk.bf16.vlgmr.msra.gmra.mrb[12].mxu0 %vm1260_vm3, %v1490_v47 }
 0x61f   : > { %2514 = vmatpush3.bf16.msra.mxu1 %v1590_v39  ;;  %2520 = vmatpush3.bf16.msra.mxu0 %v1636_v40 }
 0x620   : > { %2515 = vmatprep.mubr.msk.bf16.mxu1 %vm3012_vm2, %v3011_v9  ;;  %2521 = vmatprep.mubr.msk.bf16.mxu0 %vm3012_vm2, %v3011_v9 }
 0x621   : > { %2525 = vmatprep.subr.bf16.mxu1 %v3011_v9  ;;  %2533 = vmatprep.subr.bf16.mxu0 %v3011_v9 }
 0x633   : > { %v1477_v51 = vpop.xlane.xlu0 %1476 }
 0x634   : > { %2712 = vrcp.f32 %v1477_v51 }
 0x636   : > { %v1480_v26 = vpop.xlane.xlu1 %1479 }
 0x637   : > { %2714 = vrcp.f32 %v1480_v26 }
 0x63e   : > { %v2713_v25 = vpop.eup %2712 }
 0x63f   : > { %v1487_v27 = vmul.f32 %v2713_v25, %v3592_v49 }
 0x641   : > { %v2715_v52 = vpop.eup %2714  ;;  %v1491_v53 = vpack.c.bf16 %v1487_v27, %v1487_v27 }
 0x642   : > { %v1488_v54 = vmul.f32 %v2715_v52, %v3594_v50 }
 0x643   : > { %2516 = vmatmul.mubr.msk.bf16.vlgmr.msra.gmra.mrb[12].mxu1 %vm1260_vm3, %v1491_v53 }
 0x644   : > { %v1492_v55 = vpack.c.bf16 %v1488_v54, %v1488_v54  ;;  %2529 = vmatprep.mubr.msk.bf16.mxu1 %vm3012_vm2, %v3011_v9  ;;  %2526 = vmatpush3.bf16.msra.mxu1 %v2690_v56 }
 0x645   : > { %2527 = vmatprep.subr.bf16.mxu1 %v3011_v9 }
 0x646   : > { %2522 = vmatmul.mubr.msk.bf16.vlgmr.msra.gmra.mrb[16].mxu0 %vm1260_vm3, %v1492_v55 }
 0x647   : > { %2537 = vmatprep.mubr.msk.bf16.mxu0 %vm3012_vm2, %v3011_v9 }
 0x648   : > { %2528 = vmatpush3.bf16.msra.mxu1 %v2691_v22 }
 0x649   : > { %2541 = vmatprep.subr.bf16.mxu1 %v3011_v9 }
 0x6f1   : > { %v1534_v49 = vpop.f32.mrb[8].mxu1  ;;  %v1580_v57 = vpop.f32.mrb[12].mxu0 }
 0x6f2   : > { %v2505_v58 = vpop.f32.mrb[9].mxu1  ;;  %v2511_v59 = vpop.f32.mrb[13].mxu0 }
 0x6f3   : > { %v1537_v50 = vpop.f32.mrb[10].mxu1  ;;  %v1583_v60 = vpop.f32.mrb[14].mxu0 }
 0x6f4   : > { %v2506_v61 = vpop.f32.mrb[11].mxu1  ;;  %v2512_v62 = vpop.f32.mrb[15].mxu0 }
 0x716   : > { %v1626_v63 = vpop.f32.mrb[12].mxu1 }
 0x717   : > { %v1678_v0 = vcombine.low %v1534_v49, %v1626_v63  ;;  %v1679_v2 = vcombine.high %v1534_v49, %v1626_v63  ;;  %v2517_v3 = vpop.f32.mrb[13].mxu1 }
 0x718   : > { %v1629_v4 = vpop.f32.mrb[14].mxu1 }
 0x719   : > { %v2518_v5 = vpop.f32.mrb[15].mxu1  ;;  %v1672_v6 = vpop.f32.mrb[16].mxu0  ;;  %v1686_v12 = vrot.slane %v1678_v0, %v3516_v38  ;;  %v1693_v13 = vrot.slane %v1679_v2, %v3516_v38  ;;  %v2692_v0 = vld [vmem:[%s3457_s19] sm:$0xff]  }
 0x71a   : > { %v1694_v7 = vcombine.low %v1580_v57, %v1672_v6  ;;  %v1695_v8 = vcombine.high %v1580_v57, %v1672_v6  ;;  %v2523_v10 = vpop.f32.mrb[17].mxu0  ;;  %2534 = vmatpush3.bf16.msra.mxu0 %v2692_v0  ;;  %v2416_v6 = vld [vmem:[%s3869_s10] ss:$0 sm:$0xff] }
 0x71b   : > { %v1675_v11 = vpop.f32.mrb[18].mxu0  ;;  %2535 = vmatprep.subr.bf16.mxu0 %v3011_v9 }
 0x71c   : > { %v1702_v14 = vrot.slane %v1694_v7, %v3516_v38  ;;  %v1709_v15 = vrot.slane %v1695_v8, %v3516_v38  ;;  %v2524_v16 = vpop.f32.mrb[19].mxu0  ;;  %v2417_v8 = vld [vmem:[%s3870_s3] ss:$0 sm:$0xff] }
 0x71d   : > { %v2697_v16 = vld [vmem:[%s3463_s17 + $0x18] sm:$0xff]  }
 0x71e   : > { %v1710_v17 = vcombine.low %v1686_v12, %v1702_v14  ;;  %v1711_v18 = vcombine.high %v1686_v12, %v1702_v14  ;;  %v1726_v19 = vcombine.low %v1693_v13, %v1709_v15  ;;  %v1727_v20 = vcombine.high %v1693_v13, %v1709_v15  ;;  %v2694_v13 = vld [vmem:[%s3463_s17] sm:$0xff]   ;;  %v2695_v14 = vld [vmem:[%s3463_s17 + $0x8] sm:$0xff]   ;;  %v2696_v15 = vld [vmem:[%s3463_s17 + $0x10] sm:$0xff]   ;;  %s3873_s17 = sld [smem:[#allocation41_spill]] (!%p2428_p7) }
 0x720   : > { %v1718_v23 = vrot.slane %v1710_v17, %v3526_v48  ;;  %v1725_v24 = vrot.slane %v1711_v18, %v3526_v48  ;;  %v1734_v28 = vrot.slane %v1726_v19, %v3526_v48  ;;  %v1741_v29 = vrot.slane %v1727_v20, %v3526_v48  ;;  %v2418_v17 = vld [vmem:[%s595_s11] ss:$0 sm:$0xff]  ;;  %s3874_s11 = sld [smem:[#allocation42_spill]] (!%p2428_p7) }
 0x722   : > { %v1746_v30 = vcombine.low %v1718_v23, %v1725_v24  ;;  %v2411_v31 = vcombine.high %v1718_v23, %v1725_v24  ;;  %v1762_v32 = vcombine.low %v1734_v28, %v1741_v29  ;;  %v2412_v33 = vcombine.high %v1734_v28, %v1741_v29 }
 0x724   : > { %v1753_v34 = vrot.slane %v1746_v30, %v3516_v38  ;;  %v1761_v35 = vrot.slane %v2411_v31, %v3516_v38  ;;  %v1769_v36 = vrot.slane %v1762_v32, %v3516_v38  ;;  %v1777_v37 = vrot.slane %v2412_v33, %v3516_v38 }
 0x726   : > { %v1779_v41 = vcombine.high %v1753_v34, %v1761_v35  ;;  %v1795_v42 = vcombine.high %v1769_v36, %v1777_v37  ;;  %v1778_v21 = vcombine.low %v1753_v34, %v1761_v35  ;;  %v1794_v43 = vcombine.low %v1769_v36, %v1777_v37 }
 0x728   : > { %v1793_v44 = vrot.slane %v1779_v41, %v3526_v48  ;;  %v1809_v45 = vrot.slane %v1795_v42, %v3526_v48  ;;  %v1786_v46 = vrot.slane %v1778_v21, %v3526_v48  ;;  %v1802_v47 = vrot.slane %v1794_v43, %v3526_v48 }
 0x72a   : > { %v1812_v39 = vcombine.low %v1793_v44, %v1809_v45  ;;  %v1811_v40 = vcombine.high %v1786_v46, %v1802_v47  ;;  %v1813_v51 = vcombine.high %v1793_v44, %v1809_v45  ;;  %v1810_v26 = vcombine.low %v1786_v46, %v1802_v47 }
 0x72c   : > { %1819 = vrot.lane.b32.xlu1 %v1812_v39, %s3020_s2  ;;  %1815 = vrot.lane.b32.xlu0 %v1811_v40, %s3021_s15  ;;  %v3023_v39 = vmov 1.0  }
 0x730   : > { %1823 = vrot.lane.b32.xlu0 %v1813_v51, %s3022_s21 }
 0x79e   : > { %v1816_v38 = vpop.permute.xlu0 %1815  ;;  %v1820_v25 = vpop.permute.xlu1 %1819 }
 0x79f   : > { %v1826_v27 = vsel %vm1260_vm3, %v1810_v26, %v1816_v38 }
 0x7a0   : > { %v1828_v53 = vsel %vm1827_vm5, %v1826_v27, %v1820_v25 }
 0x7a2   : > { %v1824_v52 = vpop.permute.xlu0 %1823 }
 0x7a3   : > { %v1830_v54 = vsel %vm1829_vm6, %v1828_v53, %v1824_v52  ;;  %v2422_v52 = vld [vmem:[%s705_s24] ss:$0 sm:$0xff] }
 0x7a4   : > { %v1831_v48 = vpack.c.bf16 %v1830_v54, %v1830_v54 }
 0x7a6   : > { %2530 = vmatmul.mubr.msk.bf16.vlgmr.msra.gmra.mrb[16].mxu1 %vm717_vm1, %v1831_v48 }
 0x7a7   : > { %2549 = vmatprep.mubr.msk.bf16.mxu1 %vm3012_vm2, %v3011_v9  ;;  %2542 = vmatpush3.bf16.msra.mxu1 %v2694_v13 }
 0x7a8   : > { %2543 = vmatprep.subr.bf16.mxu1 %v3011_v9 }
 0x7ab   : > { %2544 = vmatpush3.bf16.msra.mxu1 %v2695_v14 }
 0x7ac   : > { %2545 = vmatprep.subr.bf16.mxu1 %v3011_v9 }
 0x7af   : > { %2546 = vmatpush3.bf16.msra.mxu1 %v2696_v15 }
 0x7b0   : > { %2547 = vmatprep.subr.bf16.mxu1 %v3011_v9 }
 0x7b3   : > { %2548 = vmatpush3.bf16.msra.mxu1 %v2697_v16 }
 0x879   : > { %v1885_v55 = vpop.f32.mrb[16].mxu1 }
 0x87a   : > { %v3665_v56 = vadd.f32 %v1885_v55, %v3473_v1  ;;  %v2531_v49 = vpop.f32.mrb[17].mxu1  ;;  %v2693_v1 = vld [vmem:[%s3457_s19 + $0x8] sm:$0xff]  }
 0x87b   : > { %v1888_v57 = vpop.f32.mrb[18].mxu1  ;;  %2536 = vmatpush3.bf16.msra.mxu0 %v2693_v1 }
 0x87c   : > { %v2532_v58 = vpop.f32.mrb[19].mxu1  ;;  %v1894_v59 = vsel %vm717_vm1, %v3665_v56, 0.0 }
 0x87d   : > { %1895 = vadd.xlane.f32.xlu1 %v1894_v59 }
 0x90a   : > { %v1896_v50 = vpop.xlane.xlu1 %1895 }
 0x90b   : > { %v1897_v60 = vmul.f32 0.03125, %v1896_v50 }
 0x90d   : > { %v1898_v61 = vsub.f32 %v3665_v56, %v1897_v60 }
 0x90f   : > { %v1899_v62 = vmul.f32 %v1898_v61, %v1898_v61 }
 0x911   : > { %v1900_v63 = vsel %vm717_vm1, %v1899_v62, 0.0 }
 0x912   : > { %1901 = vadd.xlane.f32.xlu0 %v1900_v63 }
 0x99f   : > { %v1902_v2 = vpop.xlane.xlu0 %1901 }
 0x9a0   : > { %v1903_v3 = vmul.f32 0.03125, %v1902_v2  ;;  %v2429_v2 = vld [vmem:[%s3873_s17] ss:$0 sm:$0xff] (!%p2428_p7) }
 0x9a2   : > { %v1904_v4 = vadd.f32 1e-05, %v1903_v3 }
 0x9a4   : > { %2716 = vrsqrt.f32 %v1904_v4  ;;  %v2430_v4 = vld [vmem:[%s3874_s11] ss:$0 sm:$0xff] (!%p2428_p7) }
 0x9ae   : > { %v2717_v5 = vpop.eup %2716 }
 0x9af   : > { %v1906_v7 = vmul.f32 %v2717_v5, %v1898_v61 }
 0x9b1   : > { %v1913_v10 = vmul.f32 %v2416_v6, %v1906_v7 }
 0x9b3   : > { %v1920_v11 = vadd.f32 %v2417_v8, %v1913_v10 }
 0x9b5   : > { %v1921_v12 = vpack.c.bf16 %v1920_v11, %v1920_v11 }
 0x9b7   : > { %2538 = vmatmul.mubr.msk.bf16.vlgmr.msra.gmra.mrb[20].mxu0 %vm717_vm1, %v1921_v12 }
 0xa8a   : > { %v1982_v18 = vpop.f32.mrb[20].mxu0 }
 0xa8b   : > { %v1983_v19 = vadd.f32 %v2418_v17, %v1982_v18  ;;  %v2539_v20 = vpop.f32.mrb[21].mxu0 }
 0xa8c   : > { %v1985_v22 = vpop.f32.mrb[22].mxu0 }
 0xa8d   : > { %v1989_v23 = vmul.f32 0.70710677, %v1983_v19  ;;  %v2540_v24 = vpop.f32.mrb[23].mxu0  ;;  %v1988_v26 = vmul.f32 0.5, %v1983_v19 }
 0xa8f   : > { %v1992_v28 = vand.u32 2147483647, %v1989_v23  ;;  %vm1990_vm7 = vcmp.lt.f32.partialorder %v1989_v23, 0.0 }
 0xa90   : > { %v1991_v40 = vsel %vm1990_vm7, -1.0, %v3023_v39 }
 0xa91   : > { %v1993_v29 = vmul.f32 0.3275911, %v1992_v28  ;;  %v2006_v31 = vsub.f32 0.0, %v1992_v28 }
 0xa93   : > { %v1994_v30 = vadd.f32 1.0, %v1993_v29  ;;  %v2007_v33 = vmul.f32 %v2006_v31, %v1992_v28 }
 0xa95   : > { %2718 = vrcp.f32 %v1994_v30  ;;  %v2008_v9 = vmul.f32 1.442695, %v2007_v33 }
 0xa97   : > { %2720 = vpow2.f32 %v2008_v9 }
 0xa9f   : > { %v2719_v32 = vpop.eup %2718 }
 0xaa0   : > { %v1997_v34 = vmul.f32 1.0614054, %v2719_v32 }
 0xaa1   : > { %v2721_v45 = vpop.eup %2720 }
 0xaa2   : > { %v1998_v35 = vadd.f32 -1.4531521, %v1997_v34 }
 0xaa4   : > { %v1999_v36 = vmul.f32 %v2719_v32, %v1998_v35 }
 0xaa6   : > { %v2000_v37 = vadd.f32 1.4214138, %v1999_v36 }
 0xaa8   : > { %v2001_v41 = vmul.f32 %v2719_v32, %v2000_v37 }
 0xaaa   : > { %v2002_v42 = vadd.f32 -0.28449672, %v2001_v41 }
 0xaac   : > { %v2003_v21 = vmul.f32 %v2719_v32, %v2002_v42 }
 0xaae   : > { %v2004_v43 = vadd.f32 0.2548296, %v2003_v21 }
 0xab0   : > { %v2005_v44 = vmul.f32 %v2719_v32, %v2004_v43 }
 0xab2   : > { %v2010_v46 = vmul.f32 %v2721_v45, %v2005_v44 }
 0xab4   : > { %v2011_v47 = vsub.f32 1.0, %v2010_v46 }
 0xab6   : > { %v2012_v51 = vmul.f32 %v2011_v47, %v1991_v40 }
 0xab8   : > { %v2013_v38 = vadd.f32 1.0, %v2012_v51 }
 0xaba   : > { %v2014_v25 = vmul.f32 %v2013_v38, %v1988_v26 }
 0xabc   : > { %v2015_v27 = vpack.c.bf16 %v2014_v25, %v2014_v25 }
 0xabe   : > { %2550 = vmatmul.mubr.msk.bf16.vlgmr.msra.gmra.mrb[20].mxu1 %vm2055_vm8, %v2015_v27 }
 0xb90   : > { %2104 = sbr.rel (%p2428_p7) target bundleno = 3280 (0xcd0), region = 100 }
 0xb91   : > { %v2093_v53 = vpop.f32.mrb[20].mxu1 }
 0xb92   : > { %v2094_v54 = vadd.f32 %v2422_v52, %v2093_v53  ;;  %v2551_v48 = vpop.f32.mrb[21].mxu1 }
 0xb93   : > { %v2096_v55 = vpop.f32.mrb[22].mxu1 }
 0xb94   : > { %v2099_v49 = vadd.f32 %v2094_v54, %v3665_v56  ;;  %v2552_v57 = vpop.f32.mrb[23].mxu1 }
 0xb96   : > { %2100 = vst.msk [vmem:[#allocation2] sm:$0xff] %vm717_vm1, %v2099_v49  ;;  %v2107_v58 = vsel (!%p2428_p7), %vm717_vm1, %v2099_v49, 0.0 }
 0xb97   : > { %2108 = vadd.xlane.f32.xlu0 %v2107_v58 }
 0xc24   : > { %v2109_v59 = vpop.xlane.xlu0 %2108 }
 0xc25   : > { %v2110_v50 = vmul.f32 0.03125, %v2109_v59 }
 0xc27   : > { %v2111_v60 = vsub.f32 %v2099_v49, %v2110_v50 }
 0xc29   : > { %v2112_v61 = vmul.f32 %v2111_v60, %v2111_v60 }
 0xc2b   : > { %v2113_v62 = vsel %vm717_vm1, %v2112_v61, 0.0 }
 0xc2c   : > { %2114 = vadd.xlane.f32.xlu0 %v2113_v62 }
 0xcb9   : > { %v2115_v63 = vpop.xlane.xlu0 %2114 }
 0xcba   : > { %v2116_v0 = vmul.f32 0.03125, %v2115_v63 }
 0xcbc   : > { %v2117_v56 = vadd.f32 1e-05, %v2116_v0 }
 0xcbe   : > { %2722 = vrsqrt.f32 %v2117_v56 }
 0xcc8   : > { %v2723_v1 = vpop.eup %2722 }
 0xcc9   : > { %v2119_v3 = vmul.f32 %v2723_v1, %v2111_v60 }
 0xccb   : > { %v2126_v5 = vmul.f32 %v2429_v2, %v2119_v3 }
 0xccd   : > { %v2133_v6 = vadd.f32 %v2430_v4, %v2126_v5 }
 0xccf   : > { %2134 = vst.msk [vmem:[%s3470_s29] sm:$0xff] %vm717_vm1, %v2133_v6 }
 0xcd0 PF: > { %s3875_s5 = sld [smem:[#allocation21_spill]]  ;;  %s3876_s27 = sld [smem:[#allocation43_spill]] }
 0xcd1   : > { %s2149_s22 = sshll.u32 %s3470_s29, 4  ;;  %s2136_s13 = scalar_lea.sflag [#allocation5], %s3414_s16  ;;  %s2150_s22 = int_to_ptr.vmem [resolvable:$true] %s2149_s22 }
 0xcd2   : > { %s2874_s6 = scalar_lea.vmem %s2150_s22, 128  ;;  %p3878_p13 = scmp.ne.s32.totalorder %s3844_s23, 0 }
 0xcd3   : > { %p2875_p12 = scmp.ne.s32.totalorder %s2150_s22, %s2874_s6  ;;  %s3024_s2 = smov [#allocation12]  }
 0xcd4   : > { %s2878_s15 = sshll.u32 %s3024_s2, 4  ;;  %s2879_s15 = int_to_ptr.vmem [resolvable:$false] %s2878_s15 }
 0xcd5   : > { %p2876_p0 = pnand %p2875_p12, %p3878_p13  ;;  %s2880_s21 = scalar_lea.vmem %s2879_s15, 256 }
 0xcd6   : > { %s2432_s8 = sshll.u32 %s3875_s5, 7  ;;  %s3877_s0 = smov %s3876_s27 }
 0xcd7   : > { %s3710_s1 = scalar_lea.hbm %s3876_s27, %s2432_s8  ;;  %p2877_p4 = pneg %p2876_p0 }
 0xcd8   : > { %p2881_p1 = scmp.lt.s32.totalorder %s2150_s22, %s2879_s15  ;;  %p2882_p3 = scmp.lt.s32.totalorder %s2880_s21, %s2874_s6 }
 0xcda   : > { %p2883_p5 = por %p2882_p3, %p2881_p1 }
 0xcdc   : > { %p2884_p10 = pnand %p2883_p5, %p2877_p4 }
 0xcde   : > { %2887 = shalt.err (!%p2884_p10)
}
 0xcdf   : > { %s2888_s29 = scalar_lea.hbm %s3710_s1, 128  ;;  %s2892_s3 = scalar_lea.hbm %s3877_s0, 256 }
 0xce0   : > { %p2889_p8 = scmp.ne.s32.totalorder %s3710_s1, %s2888_s29  ;;  %p2893_p2 = scmp.lt.u32.totalorder %s3710_s1, %s3877_s0 }
 0xce1   : > { %p2894_p6 = scmp.lt.u32.totalorder %s2892_s3, %s2888_s29  ;;  %p2896_p12 = scmp.lt.u32.totalorder %s2888_s29, %s3710_s1 }
 0xce2   : > { %p2890_p11 = pnand %p2889_p8, %p3878_p13 }
 0xce3   : > { %p2895_p7 = por %p2894_p6, %p2893_p2 }
 0xce4   : > { %p2891_p9 = pneg %p2890_p11 }
 0xce5   : > { %p2897_p0 = por %p2896_p12, %p2895_p7 }
 0xce7   : > { %p2898_p4 = pnand %p2897_p0, %p2891_p9 }
 0xce9   : > { %2901 = shalt.err (!%p2898_p4)
}
 0xcea   : > { %2563 = dma.vmem_to_hbm [thread:$0]  (%p3878_p13), %s2150_s22, 128, %s3710_s1, %s2136_s13  }
 0xceb PF: > { %s3879_s20 = sld [smem:[#allocation29_spill]]  ;;  %p2586_p1 = scmp.ge.s32.totalorder %s3004_s18, 2 }
 0xcec   : > { %s2161_s12 = sand.u32 1, %s2976_s28  }
 0xced   : > { %s2162_s7 = scalar_lea.sflag [#allocation5], %s2161_s12 }
 0xcf1   : > { %p3880_p3 = scmp.ne.s32.totalorder %s3879_s20, 0 }
 0xcf3   : > { %p2582_p5 = pnand %p2586_p1, %p3880_p3 }
 0xcf5   : > { %2959 = dma.done.wait (!%p2582_p5), %s2162_s7, 128  }
 0xcf6   : > { %2961 = vsyncadd (!%p2582_p5), %s2162_s7, 4294967168  ;;  %s35_s18 = sadd.s32 1, %s3004_s18   ;;  %s3881_s17 = sld [smem:[#allocation17_spill]] }
 0xcf7   : > { %p32_p10 = scmp.ge.s32.totalorder %s35_s18, 6   ;;  %s3882_s27 = sld [smem:[#allocation25_spill]] }
 0xcf8   : > { %s3883_s28 = sld [smem:[#allocation18_spill]]  ;;  %s3884_s29 = sld [smem:[#allocation19_spill]] }
 0xcf9   : > { %s3885_s30 = sld [smem:[#allocation28_spill]]  ;;  %s3886_s14 = sld [smem:[#allocation22_spill]] }
 0xcfa   : > { %s3887_s15 = sld [smem:[#allocation23_spill]]  ;;  %s3888_s16 = sld [smem:[#allocation24_spill]] }
 0xcfb   : > { %s3889_s23 = sld [smem:[#allocation26_spill]]  ;;  %s3890_s25 = smov %s2968_s26 }
 0xcfc   : > { %s3891_s26 = smov %s3881_s17  ;;  %34 = sbr.rel (!%p32_p10) target bundleno = 28 (0x1c), region = 191 }
 0xd01   : > { %s3892_s17 = smov %s3889_s23 }
 0xd03   :  { %2167 = vsyncpa [#allocation4], 1 }
 0xd04   :  { %2169 = vsyncpa [#allocation4 + $0x1], 1 }
 0xd05   :  { %2170 = vsyncpa [#allocation7], 1 }
 0xd06   :  { %2172 = vsyncpa [#allocation7 + $0x1], 1 }
 0xd07   :  { %2173 = vsyncpa [#allocation10], 1 }
 0xd08   :  { %2175 = vsyncpa [#allocation10 + $0x1], 1 }
 0xd09   :  { %2176 = vsyncpa [#allocation5], 1 }
 0xd0a   :  { %2178 = vsyncpa [#allocation5 + $0x1], 1 }

</bundles_post_ra>
